<compile_context>
chip_gen: v7x
topology: tpu7x:2x2x1
jax: 0.10.0
libtpu: 0.0.40
codegen_flags: <defaults>
</compile_context>

<pallas_src>
import math

import jax
import jax.numpy as jnp
from jax.experimental import pallas as pl
from jax.experimental.pallas import tpu as pltpu

# ----- Hyper-parameters (small shapes consistent with the module) -----
INPUT_DIM = 4
MODEL_DIM = 32
OUTPUT_DIM = 3
NUM_HEADS = 2
NUM_LAYERS = 2
SEQ_LEN = 8
FFN_DIM = 2048                      # nn.TransformerEncoderLayer default dim_feedforward
HEAD_DIM = MODEL_DIM // NUM_HEADS
LN_EPS = 1e-5                       # nn.LayerNorm default
SCALE = 1.0 / math.sqrt(HEAD_DIM)
BATCH = 2

assert MODEL_DIM % NUM_HEADS == 0

# --------------------------------------------------------------------------- #
# Packed-parameter layout (static, built once at import time).
# All small params share one (SLAB_ROWS, 128) f32 slab; every param's row
# offset is 8-aligned so in-kernel slices stay sublane-tile aligned.
# --------------------------------------------------------------------------- #
SLAB_COLS = 128


def _build_layout():
    layout = {}
    row = 0

    def add(name, nrows):
        nonlocal row
        layout[name] = row
        row += -(-nrows // 8) * 8          # round each param up to 8 rows

    add("w_emb", INPUT_DIM)
    add("b_emb", 1)
    add("w_fc", MODEL_DIM)
    add("b_fc", 1)
    for l in range(NUM_LAYERS):
        add(f"w_qkv_{l}", MODEL_DIM)       # (D, 3D)  fused q/k/v projection
        add(f"b_qkv_{l}", 1)
        add(f"w_o_{l}", MODEL_DIM)
        add(f"b_o_{l}", 1)
        add(f"ln1_w_{l}", 1)
        add(f"ln1_b_{l}", 1)
        add(f"ln2_w_{l}", 1)
        add(f"ln2_b_{l}", 1)
        add(f"b_f2_{l}", 1)
    return layout, row


SLAB_LAYOUT, SLAB_ROWS = _build_layout()

# bf16 FFN slab: per layer, rows [0, D) = w_f1, row D = b_f1 (bf16), padded to
# a multiple of 16 sublanes (bf16 packing).
F1_ROWS = MODEL_DIM + 16


def _layer_norm(t, gamma, beta):
    mu = jnp.mean(t, axis=-1, keepdims=True)
    var = jnp.mean((t - mu) ** 2, axis=-1, keepdims=True)
    return (t - mu) * jax.lax.rsqrt(var + LN_EPS) * gamma + beta


# --------------------------------------------------------------------------- #
# Pallas kernel: single invocation (no grid), layers unrolled.
# Inputs: x_last (B, input_dim) f32, small-param slab f32, two bf16 FFN slabs.
# --------------------------------------------------------------------------- #
def transformer_kernel(x_ref, slab_ref, w_f1_ref, w_f2_ref, out_ref):
    D = MODEL_DIM

    def mat(name, nrows, ncols, l=None):
        key = name if l is None else f"{name}_{l}"
        r = SLAB_LAYOUT[key]
        return slab_ref[r:r + nrows, :ncols]

    def vec(name, ncols, l=None):
        return mat(name, 1, ncols, l)

    # ---- embedding: Linear(input_dim -> model_dim) ----
    h = (jnp.dot(x_ref[...], mat("w_emb", INPUT_DIM, D),
                 preferred_element_type=jnp.float32) + vec("b_emb", D))       # (B, D)

    # ---- encoder layers (post-norm), fully unrolled ----
    for l in range(NUM_LAYERS):
        # multi-head self-attention with fused QKV projection
        qkv = (jnp.dot(h, mat("w_qkv", D, 3 * D, l),
                       preferred_element_type=jnp.float32)
               + vec("b_qkv", 3 * D, l))                                      # (B, 3D)

        ctx_heads = []
        for hd in range(NUM_HEADS):                    # static loop, plain 2-D dots
            lo = hd * HEAD_DIM
            q = qkv[:, lo:lo + HEAD_DIM]                                      # (B, Hd)
            k = qkv[:, D + lo:D + lo + HEAD_DIM]
            v = qkv[:, 2 * D + lo:2 * D + lo + HEAD_DIM]
            sc = jax.lax.dot_general(q, k, (((1,), (1,)), ((), ())),
                                     preferred_element_type=jnp.float32) * SCALE  # (B, B)
            sc = sc - jnp.max(sc, axis=-1, keepdims=True)   # numerically-safe softmax
            p = jnp.exp(sc)
            p = p / jnp.sum(p, axis=-1, keepdims=True)
            ctx_heads.append(jnp.dot(p, v, preferred_element_type=jnp.float32))
        ctx = jnp.concatenate(ctx_heads, axis=-1)                             # (B, D)

        attn = (jnp.dot(ctx, mat("w_o", D, D, l),
                        preferred_element_type=jnp.float32) + vec("b_o", D, l))
        h = _layer_norm(h + attn, vec("ln1_w", D, l), vec("ln1_b", D, l))

        # feed-forward (ReLU): pure bf16 x bf16 -> f32 MXU path, f32 accumulate
        base = l * F1_ROWS
        w1 = w_f1_ref[base:base + D, :]                                       # (D, F) bf16
        b1 = w_f1_ref[base + D:base + D + 1, :].astype(jnp.float32)           # (1, F)
        ff = jnp.dot(h.astype(jnp.bfloat16), w1,
                     preferred_element_type=jnp.float32) + b1
        ff = jnp.maximum(ff, 0.0)
        w2 = w_f2_ref[l * FFN_DIM:(l + 1) * FFN_DIM, :]                       # (F, D) bf16
        ff = (jnp.dot(ff.astype(jnp.bfloat16), w2,
                      preferred_element_type=jnp.float32) + vec("b_f2", D, l))
        h = _layer_norm(h + ff, vec("ln2_w", D, l), vec("ln2_b", D, l))

    # ---- output head: Linear(model_dim -> output_dim) on the last token ----
    out_ref[...] = (jnp.dot(h, mat("w_fc", D, OUTPUT_DIM),
                            preferred_element_type=jnp.float32)
                    + vec("b_fc", OUTPUT_DIM))


# --------------------------------------------------------------------------- #
# Parameter prep (one-time): pack small params into one f32 slab, fuse QKV,
# and store FFN weights (+ b_f1) as bf16 slabs.
# --------------------------------------------------------------------------- #
def prepare_params(params):
    slab = jnp.zeros((SLAB_ROWS, SLAB_COLS), jnp.float32)

    def put(s, name, arr):
        arr = jnp.asarray(arr, jnp.float32)
        if arr.ndim == 1:
            arr = arr[None, :]
        r = SLAB_LAYOUT[name]
        return s.at[r:r + arr.shape[0], :arr.shape[1]].set(arr)

    slab = put(slab, "w_emb", params["w_emb"])
    slab = put(slab, "b_emb", params["b_emb"])
    slab = put(slab, "w_fc", params["w_fc"])
    slab = put(slab, "b_fc", params["b_fc"])
    for l in range(NUM_LAYERS):
        w_qkv = jnp.concatenate(
            [params["w_q"][l], params["w_k"][l], params["w_v"][l]], axis=-1)   # (D, 3D)
        b_qkv = jnp.concatenate(
            [params["b_q"][l], params["b_k"][l], params["b_v"][l]], axis=-1)   # (1, 3D)
        slab = put(slab, f"w_qkv_{l}", w_qkv)
        slab = put(slab, f"b_qkv_{l}", b_qkv)
        slab = put(slab, f"w_o_{l}", params["w_o"][l])
        slab = put(slab, f"b_o_{l}", params["b_o"][l])
        slab = put(slab, f"ln1_w_{l}", params["ln1_w"][l])
        slab = put(slab, f"ln1_b_{l}", params["ln1_b"][l])
        slab = put(slab, f"ln2_w_{l}", params["ln2_w"][l])
        slab = put(slab, f"ln2_b_{l}", params["ln2_b"][l])
        slab = put(slab, f"b_f2_{l}", params["b_f2"][l])

    w_f1_slab = jnp.zeros((NUM_LAYERS * F1_ROWS, FFN_DIM), jnp.bfloat16)
    w_f2_slab = jnp.zeros((NUM_LAYERS * FFN_DIM, MODEL_DIM), jnp.bfloat16)
    for l in range(NUM_LAYERS):
        base = l * F1_ROWS
        w_f1_slab = w_f1_slab.at[base:base + MODEL_DIM, :].set(
            params["w_f1"][l].astype(jnp.bfloat16))
        w_f1_slab = w_f1_slab.at[base + MODEL_DIM, :].set(
            params["b_f1"][l][0].astype(jnp.bfloat16))
        w_f2_slab = w_f2_slab.at[l * FFN_DIM:(l + 1) * FFN_DIM, :].set(
            params["w_f2"][l].astype(jnp.bfloat16))

    return {"slab": slab, "w_f1": w_f1_slab, "w_f2": w_f2_slab}


# --------------------------------------------------------------------------- #
# Wrapper
# --------------------------------------------------------------------------- #
def transformer_forward(x, prepped):
    """x: (B, S, input_dim) float32 -> (B, output_dim) float32."""
    # Dead-work elimination: batch_first=False means attention mixes only along
    # B within a fixed s, and every other op is row-wise, so only the s = S-1
    # rows reach the output.
    x_last = x[:, -1, :]                                  # (B, input_dim)
    B = x_last.shape[0]

    # Whole model (~0.8 MiB) fits in VMEM: no grid, no pipelining — the default
    # full-array VMEM blocks give 4 input DMAs total (x, slab, w_f1, w_f2).
    return pl.pallas_call(
        transformer_kernel,
        out_shape=jax.ShapeDtypeStruct((B, OUTPUT_DIM), jnp.float32),
        compiler_params=pltpu.CompilerParams(
            vmem_limit_bytes=8 << 20,                     # footprint ~2 MiB; headroom
        ),
    )(x_last, prepped["slab"], prepped["w_f1"], prepped["w_f2"])


# --------------------------------------------------------------------------- #
# Pure-JAX reference: faithful full-sequence reimplementation of the PyTorch
# module (eval mode).  Uses the same bf16-rounded FFN weights/bias as the
# kernel so the comparison isolates kernel math (and proves the s=S-1
# dead-work elimination is exact).
# --------------------------------------------------------------------------- #
def torch_reference(x, params):
    B, S, _ = x.shape
    D, H, Hd = MODEL_DIM, NUM_HEADS, HEAD_DIM
    wf1 = params["w_f1"].astype(jnp.bfloat16).astype(jnp.float32)
    wf2 = params["w_f2"].astype(jnp.bfloat16).astype(jnp.float32)
    bf1 = params["b_f1"].astype(jnp.bfloat16).astype(jnp.float32)

    h = jnp.einsum("bsi,id->bsd", x, params["w_emb"]) + params["b_emb"]   # (B,S,D)
    # batch_first=False: dim0 (B) is the attended axis, dim1 (S) is the batch axis.
    for l in range(NUM_LAYERS):
        q = jnp.einsum("bsd,de->bse", h, params["w_q"][l]) + params["b_q"][l]
        k = jnp.einsum("bsd,de->bse", h, params["w_k"][l]) + params["b_k"][l]
        v = jnp.einsum("bsd,de->bse", h, params["w_v"][l]) + params["b_v"][l]
        q = q.reshape(B, S, H, Hd)
        k = k.reshape(B, S, H, Hd)
        v = v.reshape(B, S, H, Hd)
        sc = jnp.einsum("ishd,jshd->shij", q, k) * SCALE
        p = jax.nn.softmax(sc, axis=-1)
        ctx = jnp.einsum("shij,jshd->ishd", p, v).reshape(B, S, D)
        attn = jnp.einsum("bsd,de->bse", ctx, params["w_o"][l]) + params["b_o"][l]
        h = _layer_norm(h + attn, params["ln1_w"][l], params["ln1_b"][l])
        ff = jnp.maximum(
            jnp.einsum("bsd,df->bsf", h, wf1[l]) + bf1[l], 0.0)
        ff = jnp.einsum("bsf,fd->bsd", ff, wf2[l]) + params["b_f2"][l]
        h = _layer_norm(h + ff, params["ln2_w"][l], params["ln2_b"][l])
    return h[:, -1, :] @ params["w_fc"] + params["b_fc"]


def init_params(key):
    ks = jax.random.split(key, 16)

    def w(k, shape, scale=0.05):
        return (scale * jax.random.normal(k, shape)).astype(jnp.float32)

    L, D, F, I, O = NUM_LAYERS, MODEL_DIM, FFN_DIM, INPUT_DIM, OUTPUT_DIM
    return {
        "w_emb": w(ks[0], (I, D)),
        "b_emb": w(ks[1], (1, D)),
        "w_q": w(ks[2], (L, D, D)),
        "b_q": w(ks[3], (L, 1, D)),
        "w_k": w(ks[4], (L, D, D)),
        "b_k": w(ks[5], (L, 1, D)),
        "w_v": w(ks[6], (L, D, D)),
        "b_v": w(ks[7], (L, 1, D)),
        "w_o": w(ks[8], (L, D, D)),
        "b_o": w(ks[9], (L, 1, D)),
        "ln1_w": jnp.ones((L, 1, D), jnp.float32),
        "ln1_b": jnp.zeros((L, 1, D), jnp.float32),
        "ln2_w": jnp.ones((L, 1, D), jnp.float32),
        "ln2_b": jnp.zeros((L, 1, D), jnp.float32),
        "w_f1": w(ks[10], (L, D, F)),
        "b_f1": w(ks[11], (L, 1, F)),
        "w_f2": w(ks[12], (L, F, D)),
        "b_f2": w(ks[13], (L, 1, D)),
        "w_fc": w(ks[14], (D, O)),
        "b_fc": w(ks[15], (1, O)),
    }


if __name__ == "__main__":
    key = jax.random.PRNGKey(0)
    pkey, xkey = jax.random.split(key)
    params = init_params(pkey)
    x = jax.random.normal(xkey, (BATCH, SEQ_LEN, INPUT_DIM), dtype=jnp.float32)

    prepped = prepare_params(params)        # one-time prep: slab packing + bf16 FFN weights
    out = transformer_forward(x, prepped)
    out = jax.block_until_ready(out)

    ref = torch_reference(x, params)        # full-sequence reference (original semantics)
    assert out.shape == (BATCH, OUTPUT_DIM), out.shape
    assert bool(jnp.allclose(out, ref, atol=2e-2, rtol=2e-2)), (out, ref)

    print("KERNEL_OK")
</pallas_src>

<mosaic_0001>
module attributes {stable_mosaic.version = 11 : i64} {
  func.func @transformer_kernel(%arg0: memref<2x4xf32, #tpu.memory_space<vmem>>, %arg1: memref<296x128xf32, #tpu.memory_space<vmem>>, %arg2: memref<96x2048xbf16, #tpu.memory_space<vmem>>, %arg3: memref<4096x32xbf16, #tpu.memory_space<vmem>>, %arg4: memref<2x3xf32, #tpu.memory_space<vmem>>) attributes {dimension_semantics = [], scalar_prefetch = 0 : i64, scratch_operands = 0 : i64, tpu.core_type = #tpu.core_type<tc>} {
    %c0 = arith.constant 0 : index
    %c0_0 = arith.constant 0 : index
    %0 = vector.load %arg0[%c0, %c0_0] : memref<2x4xf32, #tpu.memory_space<vmem>>, vector<2x4xf32>
    %c0_1 = arith.constant 0 : index
    %c0_2 = arith.constant 0 : index
    %1 = vector.load %arg1[%c0_1, %c0_2] : memref<296x128xf32, #tpu.memory_space<vmem>>, vector<4x32xf32>
    %cst = arith.constant dense<0.000000e+00> : vector<2x32xf32>
    %2 = tpu.matmul %0, %1, %cst {dimension_numbers = #tpu.dot_dimension_numbers<[1], [0], [0], [1], [0, 0, 1, 1], [], []>} : vector<2x4xf32>, vector<4x32xf32>, vector<2x32xf32> -> vector<2x32xf32>
    %c8 = arith.constant 8 : index
    %c0_3 = arith.constant 0 : index
    %3 = vector.load %arg1[%c8, %c0_3] : memref<296x128xf32, #tpu.memory_space<vmem>>, vector<1x32xf32>
    %4 = vector.broadcast %3 : vector<1x32xf32> to vector<2x32xf32>
    %5 = arith.addf %2, %4 : vector<2x32xf32>
    %c56 = arith.constant 56 : index
    %c0_4 = arith.constant 0 : index
    %6 = vector.load %arg1[%c56, %c0_4] : memref<296x128xf32, #tpu.memory_space<vmem>>, vector<32x96xf32>
    %cst_5 = arith.constant dense<0.000000e+00> : vector<2x96xf32>
    %7 = tpu.matmul %5, %6, %cst_5 {dimension_numbers = #tpu.dot_dimension_numbers<[1], [0], [0], [1], [0, 0, 1, 1], [], []>} : vector<2x32xf32>, vector<32x96xf32>, vector<2x96xf32> -> vector<2x96xf32>
    %c88 = arith.constant 88 : index
    %c0_6 = arith.constant 0 : index
    %8 = vector.load %arg1[%c88, %c0_6] : memref<296x128xf32, #tpu.memory_space<vmem>>, vector<1x96xf32>
    %9 = vector.broadcast %8 : vector<1x96xf32> to vector<2x96xf32>
    %10 = arith.addf %7, %9 : vector<2x96xf32>
    %11 = vector.extract_strided_slice %10 {offsets = [0, 0], sizes = [2, 16], strides = [1, 1]} : vector<2x96xf32> to vector<2x16xf32>
    %12 = vector.extract_strided_slice %10 {offsets = [0, 32], sizes = [2, 16], strides = [1, 1]} : vector<2x96xf32> to vector<2x16xf32>
    %13 = vector.extract_strided_slice %10 {offsets = [0, 64], sizes = [2, 16], strides = [1, 1]} : vector<2x96xf32> to vector<2x16xf32>
    %cst_7 = arith.constant dense<0.000000e+00> : vector<2x2xf32>
    %14 = tpu.matmul %11, %12, %cst_7 {dimension_numbers = #tpu.dot_dimension_numbers<[1], [1], [0], [0], [0, 0, 1, 0], [], []>} : vector<2x16xf32>, vector<2x16xf32>, vector<2x2xf32> -> vector<2x2xf32>
    %cst_8 = arith.constant 2.500000e-01 : f32
    %15 = vector.broadcast %cst_8 : f32 to vector<2x2xf32>
    %16 = arith.mulf %14, %15 : vector<2x2xf32>
    %cst_9 = arith.constant dense<0xFF800000> : vector<2xf32>
    %17 = vector.multi_reduction <maximumf>, %16, %cst_9 [1] : vector<2x2xf32> to vector<2xf32>
    %18 = vector.shape_cast %17 : vector<2xf32> to vector<2x1xf32>
    %19 = vector.broadcast %18 : vector<2x1xf32> to vector<2x2xf32>
    %20 = arith.subf %16, %19 : vector<2x2xf32>
    %21 = math.exp %20 : vector<2x2xf32>
    %cst_10 = arith.constant dense<0.000000e+00> : vector<2xf32>
    %22 = vector.multi_reduction <add>, %21, %cst_10 [1] : vector<2x2xf32> to vector<2xf32>
    %23 = vector.shape_cast %22 : vector<2xf32> to vector<2x1xf32>
    %24 = vector.broadcast %23 : vector<2x1xf32> to vector<2x2xf32>
    %25 = arith.divf %21, %24 : vector<2x2xf32>
    %cst_11 = arith.constant dense<0.000000e+00> : vector<2x16xf32>
    %26 = tpu.matmul %25, %13, %cst_11 {dimension_numbers = #tpu.dot_dimension_numbers<[1], [0], [0], [1], [0, 0, 1, 1], [], []>} : vector<2x2xf32>, vector<2x16xf32>, vector<2x16xf32> -> vector<2x16xf32>
    %27 = vector.extract_strided_slice %10 {offsets = [0, 16], sizes = [2, 16], strides = [1, 1]} : vector<2x96xf32> to vector<2x16xf32>
    %28 = vector.extract_strided_slice %10 {offsets = [0, 48], sizes = [2, 16], strides = [1, 1]} : vector<2x96xf32> to vector<2x16xf32>
    %29 = vector.extract_strided_slice %10 {offsets = [0, 80], sizes = [2, 16], strides = [1, 1]} : vector<2x96xf32> to vector<2x16xf32>
    %cst_12 = arith.constant dense<0.000000e+00> : vector<2x2xf32>
    %30 = tpu.matmul %27, %28, %cst_12 {dimension_numbers = #tpu.dot_dimension_numbers<[1], [1], [0], [0], [0, 0, 1, 0], [], []>} : vector<2x16xf32>, vector<2x16xf32>, vector<2x2xf32> -> vector<2x2xf32>
    %cst_13 = arith.constant 2.500000e-01 : f32
    %31 = vector.broadcast %cst_13 : f32 to vector<2x2xf32>
    %32 = arith.mulf %30, %31 : vector<2x2xf32>
    %cst_14 = arith.constant dense<0xFF800000> : vector<2xf32>
    %33 = vector.multi_reduction <maximumf>, %32, %cst_14 [1] : vector<2x2xf32> to vector<2xf32>
    %34 = vector.shape_cast %33 : vector<2xf32> to vector<2x1xf32>
    %35 = vector.broadcast %34 : vector<2x1xf32> to vector<2x2xf32>
    %36 = arith.subf %32, %35 : vector<2x2xf32>
    %37 = math.exp %36 : vector<2x2xf32>
    %cst_15 = arith.constant dense<0.000000e+00> : vector<2xf32>
    %38 = vector.multi_reduction <add>, %37, %cst_15 [1] : vector<2x2xf32> to vector<2xf32>
    %39 = vector.shape_cast %38 : vector<2xf32> to vector<2x1xf32>
    %40 = vector.broadcast %39 : vector<2x1xf32> to vector<2x2xf32>
    %41 = arith.divf %37, %40 : vector<2x2xf32>
    %cst_16 = arith.constant dense<0.000000e+00> : vector<2x16xf32>
    %42 = tpu.matmul %41, %29, %cst_16 {dimension_numbers = #tpu.dot_dimension_numbers<[1], [0], [0], [1], [0, 0, 1, 1], [], []>} : vector<2x2xf32>, vector<2x16xf32>, vector<2x16xf32> -> vector<2x16xf32>
    %43 = tpu.concatenate %26, %42 in 1 : vector<2x16xf32>, vector<2x16xf32> -> vector<2x32xf32>
    %c96 = arith.constant 96 : index
    %c0_17 = arith.constant 0 : index
    %44 = vector.load %arg1[%c96, %c0_17] : memref<296x128xf32, #tpu.memory_space<vmem>>, vector<32x32xf32>
    %cst_18 = arith.constant dense<0.000000e+00> : vector<2x32xf32>
    %45 = tpu.matmul %43, %44, %cst_18 {dimension_numbers = #tpu.dot_dimension_numbers<[1], [0], [0], [1], [0, 0, 1, 1], [], []>} : vector<2x32xf32>, vector<32x32xf32>, vector<2x32xf32> -> vector<2x32xf32>
    %c128 = arith.constant 128 : index
    %c0_19 = arith.constant 0 : index
    %46 = vector.load %arg1[%c128, %c0_19] : memref<296x128xf32, #tpu.memory_space<vmem>>, vector<1x32xf32>
    %47 = vector.broadcast %46 : vector<1x32xf32> to vector<2x32xf32>
    %48 = arith.addf %45, %47 : vector<2x32xf32>
    %49 = arith.addf %5, %48 : vector<2x32xf32>
    %c136 = arith.constant 136 : index
    %c0_20 = arith.constant 0 : index
    %50 = vector.load %arg1[%c136, %c0_20] : memref<296x128xf32, #tpu.memory_space<vmem>>, vector<1x32xf32>
    %c144 = arith.constant 144 : index
    %c0_21 = arith.constant 0 : index
    %51 = vector.load %arg1[%c144, %c0_21] : memref<296x128xf32, #tpu.memory_space<vmem>>, vector<1x32xf32>
    %cst_22 = arith.constant dense<0.000000e+00> : vector<2xf32>
    %52 = vector.multi_reduction <add>, %49, %cst_22 [1] : vector<2x32xf32> to vector<2xf32>
    %53 = vector.shape_cast %52 : vector<2xf32> to vector<2x1xf32>
    %cst_23 = arith.constant 3.200000e+01 : f32
    %54 = vector.broadcast %cst_23 : f32 to vector<2x1xf32>
    %55 = arith.divf %53, %54 : vector<2x1xf32>
    %56 = vector.broadcast %55 : vector<2x1xf32> to vector<2x32xf32>
    %57 = arith.subf %49, %56 : vector<2x32xf32>
    %58 = arith.mulf %57, %57 : vector<2x32xf32>
    %cst_24 = arith.constant dense<0.000000e+00> : vector<2xf32>
    %59 = vector.multi_reduction <add>, %58, %cst_24 [1] : vector<2x32xf32> to vector<2xf32>
    %60 = vector.shape_cast %59 : vector<2xf32> to vector<2x1xf32>
    %cst_25 = arith.constant 3.200000e+01 : f32
    %61 = vector.broadcast %cst_25 : f32 to vector<2x1xf32>
    %62 = arith.divf %60, %61 : vector<2x1xf32>
    %63 = vector.broadcast %55 : vector<2x1xf32> to vector<2x32xf32>
    %64 = arith.subf %49, %63 : vector<2x32xf32>
    %cst_26 = arith.constant 9.99999974E-6 : f32
    %65 = vector.broadcast %cst_26 : f32 to vector<2x1xf32>
    %66 = arith.addf %62, %65 : vector<2x1xf32>
    %67 = math.rsqrt %66 : vector<2x1xf32>
    %68 = vector.broadcast %67 : vector<2x1xf32> to vector<2x32xf32>
    %69 = arith.mulf %64, %68 : vector<2x32xf32>
    %70 = vector.broadcast %50 : vector<1x32xf32> to vector<2x32xf32>
    %71 = arith.mulf %69, %70 : vector<2x32xf32>
    %72 = vector.broadcast %51 : vector<1x32xf32> to vector<2x32xf32>
    %73 = arith.addf %71, %72 : vector<2x32xf32>
    %c0_27 = arith.constant 0 : index
    %c0_28 = arith.constant 0 : index
    %74 = vector.load %arg2[%c0_27, %c0_28] : memref<96x2048xbf16, #tpu.memory_space<vmem>>, vector<32x2048xbf16>
    %c32 = arith.constant 32 : index
    %c0_29 = arith.constant 0 : index
    %75 = vector.load %arg2[%c32, %c0_29] : memref<96x2048xbf16, #tpu.memory_space<vmem>>, vector<1x2048xbf16>
    %76 = arith.extf %75 : vector<1x2048xbf16> to vector<1x2048xf32>
    %77 = arith.truncf %73 : vector<2x32xf32> to vector<2x32xbf16>
    %cst_30 = arith.constant dense<0.000000e+00> : vector<2x2048xf32>
    %78 = tpu.matmul %77, %74, %cst_30 {dimension_numbers = #tpu.dot_dimension_numbers<[1], [0], [0], [1], [0, 0, 1, 1], [], []>} : vector<2x32xbf16>, vector<32x2048xbf16>, vector<2x2048xf32> -> vector<2x2048xf32>
    %79 = vector.broadcast %76 : vector<1x2048xf32> to vector<2x2048xf32>
    %80 = arith.addf %78, %79 : vector<2x2048xf32>
    %cst_31 = arith.constant 0.000000e+00 : f32
    %81 = vector.broadcast %cst_31 : f32 to vector<2x2048xf32>
    %82 = arith.maximumf %80, %81 : vector<2x2048xf32>
    %c0_32 = arith.constant 0 : index
    %c0_33 = arith.constant 0 : index
    %83 = vector.load %arg3[%c0_32, %c0_33] : memref<4096x32xbf16, #tpu.memory_space<vmem>>, vector<2048x32xbf16>
    %84 = arith.truncf %82 : vector<2x2048xf32> to vector<2x2048xbf16>
    %cst_34 = arith.constant dense<0.000000e+00> : vector<2x32xf32>
    %85 = tpu.matmul %84, %83, %cst_34 {dimension_numbers = #tpu.dot_dimension_numbers<[1], [0], [0], [1], [0, 0, 1, 1], [], []>} : vector<2x2048xbf16>, vector<2048x32xbf16>, vector<2x32xf32> -> vector<2x32xf32>
    %c168 = arith.constant 168 : index
    %c0_35 = arith.constant 0 : index
    %86 = vector.load %arg1[%c168, %c0_35] : memref<296x128xf32, #tpu.memory_space<vmem>>, vector<1x32xf32>
    %87 = vector.broadcast %86 : vector<1x32xf32> to vector<2x32xf32>
    %88 = arith.addf %85, %87 : vector<2x32xf32>
    %89 = arith.addf %73, %88 : vector<2x32xf32>
    %c152 = arith.constant 152 : index
    %c0_36 = arith.constant 0 : index
    %90 = vector.load %arg1[%c152, %c0_36] : memref<296x128xf32, #tpu.memory_space<vmem>>, vector<1x32xf32>
    %c160 = arith.constant 160 : index
    %c0_37 = arith.constant 0 : index
    %91 = vector.load %arg1[%c160, %c0_37] : memref<296x128xf32, #tpu.memory_space<vmem>>, vector<1x32xf32>
    %cst_38 = arith.constant dense<0.000000e+00> : vector<2xf32>
    %92 = vector.multi_reduction <add>, %89, %cst_38 [1] : vector<2x32xf32> to vector<2xf32>
    %93 = vector.shape_cast %92 : vector<2xf32> to vector<2x1xf32>
    %cst_39 = arith.constant 3.200000e+01 : f32
    %94 = vector.broadcast %cst_39 : f32 to vector<2x1xf32>
    %95 = arith.divf %93, %94 : vector<2x1xf32>
    %96 = vector.broadcast %95 : vector<2x1xf32> to vector<2x32xf32>
    %97 = arith.subf %89, %96 : vector<2x32xf32>
    %98 = arith.mulf %97, %97 : vector<2x32xf32>
    %cst_40 = arith.constant dense<0.000000e+00> : vector<2xf32>
    %99 = vector.multi_reduction <add>, %98, %cst_40 [1] : vector<2x32xf32> to vector<2xf32>
    %100 = vector.shape_cast %99 : vector<2xf32> to vector<2x1xf32>
    %cst_41 = arith.constant 3.200000e+01 : f32
    %101 = vector.broadcast %cst_41 : f32 to vector<2x1xf32>
    %102 = arith.divf %100, %101 : vector<2x1xf32>
    %103 = vector.broadcast %95 : vector<2x1xf32> to vector<2x32xf32>
    %104 = arith.subf %89, %103 : vector<2x32xf32>
    %cst_42 = arith.constant 9.99999974E-6 : f32
    %105 = vector.broadcast %cst_42 : f32 to vector<2x1xf32>
    %106 = arith.addf %102, %105 : vector<2x1xf32>
    %107 = math.rsqrt %106 : vector<2x1xf32>
    %108 = vector.broadcast %107 : vector<2x1xf32> to vector<2x32xf32>
    %109 = arith.mulf %104, %108 : vector<2x32xf32>
    %110 = vector.broadcast %90 : vector<1x32xf32> to vector<2x32xf32>
    %111 = arith.mulf %109, %110 : vector<2x32xf32>
    %112 = vector.broadcast %91 : vector<1x32xf32> to vector<2x32xf32>
    %113 = arith.addf %111, %112 : vector<2x32xf32>
    %c176 = arith.constant 176 : index
    %c0_43 = arith.constant 0 : index
    %114 = vector.load %arg1[%c176, %c0_43] : memref<296x128xf32, #tpu.memory_space<vmem>>, vector<32x96xf32>
    %cst_44 = arith.constant dense<0.000000e+00> : vector<2x96xf32>
    %115 = tpu.matmul %113, %114, %cst_44 {dimension_numbers = #tpu.dot_dimension_numbers<[1], [0], [0], [1], [0, 0, 1, 1], [], []>} : vector<2x32xf32>, vector<32x96xf32>, vector<2x96xf32> -> vector<2x96xf32>
    %c208 = arith.constant 208 : index
    %c0_45 = arith.constant 0 : index
    %116 = vector.load %arg1[%c208, %c0_45] : memref<296x128xf32, #tpu.memory_space<vmem>>, vector<1x96xf32>
    %117 = vector.broadcast %116 : vector<1x96xf32> to vector<2x96xf32>
    %118 = arith.addf %115, %117 : vector<2x96xf32>
    %119 = vector.extract_strided_slice %118 {offsets = [0, 0], sizes = [2, 16], strides = [1, 1]} : vector<2x96xf32> to vector<2x16xf32>
    %120 = vector.extract_strided_slice %118 {offsets = [0, 32], sizes = [2, 16], strides = [1, 1]} : vector<2x96xf32> to vector<2x16xf32>
    %121 = vector.extract_strided_slice %118 {offsets = [0, 64], sizes = [2, 16], strides = [1, 1]} : vector<2x96xf32> to vector<2x16xf32>
    %cst_46 = arith.constant dense<0.000000e+00> : vector<2x2xf32>
    %122 = tpu.matmul %119, %120, %cst_46 {dimension_numbers = #tpu.dot_dimension_numbers<[1], [1], [0], [0], [0, 0, 1, 0], [], []>} : vector<2x16xf32>, vector<2x16xf32>, vector<2x2xf32> -> vector<2x2xf32>
    %cst_47 = arith.constant 2.500000e-01 : f32
    %123 = vector.broadcast %cst_47 : f32 to vector<2x2xf32>
    %124 = arith.mulf %122, %123 : vector<2x2xf32>
    %cst_48 = arith.constant dense<0xFF800000> : vector<2xf32>
    %125 = vector.multi_reduction <maximumf>, %124, %cst_48 [1] : vector<2x2xf32> to vector<2xf32>
    %126 = vector.shape_cast %125 : vector<2xf32> to vector<2x1xf32>
    %127 = vector.broadcast %126 : vector<2x1xf32> to vector<2x2xf32>
    %128 = arith.subf %124, %127 : vector<2x2xf32>
    %129 = math.exp %128 : vector<2x2xf32>
    %cst_49 = arith.constant dense<0.000000e+00> : vector<2xf32>
    %130 = vector.multi_reduction <add>, %129, %cst_49 [1] : vector<2x2xf32> to vector<2xf32>
    %131 = vector.shape_cast %130 : vector<2xf32> to vector<2x1xf32>
    %132 = vector.broadcast %131 : vector<2x1xf32> to vector<2x2xf32>
    %133 = arith.divf %129, %132 : vector<2x2xf32>
    %cst_50 = arith.constant dense<0.000000e+00> : vector<2x16xf32>
    %134 = tpu.matmul %133, %121, %cst_50 {dimension_numbers = #tpu.dot_dimension_numbers<[1], [0], [0], [1], [0, 0, 1, 1], [], []>} : vector<2x2xf32>, vector<2x16xf32>, vector<2x16xf32> -> vector<2x16xf32>
    %135 = vector.extract_strided_slice %118 {offsets = [0, 16], sizes = [2, 16], strides = [1, 1]} : vector<2x96xf32> to vector<2x16xf32>
    %136 = vector.extract_strided_slice %118 {offsets = [0, 48], sizes = [2, 16], strides = [1, 1]} : vector<2x96xf32> to vector<2x16xf32>
    %137 = vector.extract_strided_slice %118 {offsets = [0, 80], sizes = [2, 16], strides = [1, 1]} : vector<2x96xf32> to vector<2x16xf32>
    %cst_51 = arith.constant dense<0.000000e+00> : vector<2x2xf32>
    %138 = tpu.matmul %135, %136, %cst_51 {dimension_numbers = #tpu.dot_dimension_numbers<[1], [1], [0], [0], [0, 0, 1, 0], [], []>} : vector<2x16xf32>, vector<2x16xf32>, vector<2x2xf32> -> vector<2x2xf32>
    %cst_52 = arith.constant 2.500000e-01 : f32
    %139 = vector.broadcast %cst_52 : f32 to vector<2x2xf32>
    %140 = arith.mulf %138, %139 : vector<2x2xf32>
    %cst_53 = arith.constant dense<0xFF800000> : vector<2xf32>
    %141 = vector.multi_reduction <maximumf>, %140, %cst_53 [1] : vector<2x2xf32> to vector<2xf32>
    %142 = vector.shape_cast %141 : vector<2xf32> to vector<2x1xf32>
    %143 = vector.broadcast %142 : vector<2x1xf32> to vector<2x2xf32>
    %144 = arith.subf %140, %143 : vector<2x2xf32>
    %145 = math.exp %144 : vector<2x2xf32>
    %cst_54 = arith.constant dense<0.000000e+00> : vector<2xf32>
    %146 = vector.multi_reduction <add>, %145, %cst_54 [1] : vector<2x2xf32> to vector<2xf32>
    %147 = vector.shape_cast %146 : vector<2xf32> to vector<2x1xf32>
    %148 = vector.broadcast %147 : vector<2x1xf32> to vector<2x2xf32>
    %149 = arith.divf %145, %148 : vector<2x2xf32>
    %cst_55 = arith.constant dense<0.000000e+00> : vector<2x16xf32>
    %150 = tpu.matmul %149, %137, %cst_55 {dimension_numbers = #tpu.dot_dimension_numbers<[1], [0], [0], [1], [0, 0, 1, 1], [], []>} : vector<2x2xf32>, vector<2x16xf32>, vector<2x16xf32> -> vector<2x16xf32>
    %151 = tpu.concatenate %134, %150 in 1 : vector<2x16xf32>, vector<2x16xf32> -> vector<2x32xf32>
    %c216 = arith.constant 216 : index
    %c0_56 = arith.constant 0 : index
    %152 = vector.load %arg1[%c216, %c0_56] : memref<296x128xf32, #tpu.memory_space<vmem>>, vector<32x32xf32>
    %cst_57 = arith.constant dense<0.000000e+00> : vector<2x32xf32>
    %153 = tpu.matmul %151, %152, %cst_57 {dimension_numbers = #tpu.dot_dimension_numbers<[1], [0], [0], [1], [0, 0, 1, 1], [], []>} : vector<2x32xf32>, vector<32x32xf32>, vector<2x32xf32> -> vector<2x32xf32>
    %c248 = arith.constant 248 : index
    %c0_58 = arith.constant 0 : index
    %154 = vector.load %arg1[%c248, %c0_58] : memref<296x128xf32, #tpu.memory_space<vmem>>, vector<1x32xf32>
    %155 = vector.broadcast %154 : vector<1x32xf32> to vector<2x32xf32>
    %156 = arith.addf %153, %155 : vector<2x32xf32>
    %157 = arith.addf %113, %156 : vector<2x32xf32>
    %c256 = arith.constant 256 : index
    %c0_59 = arith.constant 0 : index
    %158 = vector.load %arg1[%c256, %c0_59] : memref<296x128xf32, #tpu.memory_space<vmem>>, vector<1x32xf32>
    %c264 = arith.constant 264 : index
    %c0_60 = arith.constant 0 : index
    %159 = vector.load %arg1[%c264, %c0_60] : memref<296x128xf32, #tpu.memory_space<vmem>>, vector<1x32xf32>
    %cst_61 = arith.constant dense<0.000000e+00> : vector<2xf32>
    %160 = vector.multi_reduction <add>, %157, %cst_61 [1] : vector<2x32xf32> to vector<2xf32>
    %161 = vector.shape_cast %160 : vector<2xf32> to vector<2x1xf32>
    %cst_62 = arith.constant 3.200000e+01 : f32
    %162 = vector.broadcast %cst_62 : f32 to vector<2x1xf32>
    %163 = arith.divf %161, %162 : vector<2x1xf32>
    %164 = vector.broadcast %163 : vector<2x1xf32> to vector<2x32xf32>
    %165 = arith.subf %157, %164 : vector<2x32xf32>
    %166 = arith.mulf %165, %165 : vector<2x32xf32>
    %cst_63 = arith.constant dense<0.000000e+00> : vector<2xf32>
    %167 = vector.multi_reduction <add>, %166, %cst_63 [1] : vector<2x32xf32> to vector<2xf32>
    %168 = vector.shape_cast %167 : vector<2xf32> to vector<2x1xf32>
    %cst_64 = arith.constant 3.200000e+01 : f32
    %169 = vector.broadcast %cst_64 : f32 to vector<2x1xf32>
    %170 = arith.divf %168, %169 : vector<2x1xf32>
    %171 = vector.broadcast %163 : vector<2x1xf32> to vector<2x32xf32>
    %172 = arith.subf %157, %171 : vector<2x32xf32>
    %cst_65 = arith.constant 9.99999974E-6 : f32
    %173 = vector.broadcast %cst_65 : f32 to vector<2x1xf32>
    %174 = arith.addf %170, %173 : vector<2x1xf32>
    %175 = math.rsqrt %174 : vector<2x1xf32>
    %176 = vector.broadcast %175 : vector<2x1xf32> to vector<2x32xf32>
    %177 = arith.mulf %172, %176 : vector<2x32xf32>
    %178 = vector.broadcast %158 : vector<1x32xf32> to vector<2x32xf32>
    %179 = arith.mulf %177, %178 : vector<2x32xf32>
    %180 = vector.broadcast %159 : vector<1x32xf32> to vector<2x32xf32>
    %181 = arith.addf %179, %180 : vector<2x32xf32>
    %c48 = arith.constant 48 : index
    %c0_66 = arith.constant 0 : index
    %182 = vector.load %arg2[%c48, %c0_66] : memref<96x2048xbf16, #tpu.memory_space<vmem>>, vector<32x2048xbf16>
    %c80 = arith.constant 80 : index
    %c0_67 = arith.constant 0 : index
    %183 = vector.load %arg2[%c80, %c0_67] : memref<96x2048xbf16, #tpu.memory_space<vmem>>, vector<1x2048xbf16>
    %184 = arith.extf %183 : vector<1x2048xbf16> to vector<1x2048xf32>
    %185 = arith.truncf %181 : vector<2x32xf32> to vector<2x32xbf16>
    %cst_68 = arith.constant dense<0.000000e+00> : vector<2x2048xf32>
    %186 = tpu.matmul %185, %182, %cst_68 {dimension_numbers = #tpu.dot_dimension_numbers<[1], [0], [0], [1], [0, 0, 1, 1], [], []>} : vector<2x32xbf16>, vector<32x2048xbf16>, vector<2x2048xf32> -> vector<2x2048xf32>
    %187 = vector.broadcast %184 : vector<1x2048xf32> to vector<2x2048xf32>
    %188 = arith.addf %186, %187 : vector<2x2048xf32>
    %cst_69 = arith.constant 0.000000e+00 : f32
    %189 = vector.broadcast %cst_69 : f32 to vector<2x2048xf32>
    %190 = arith.maximumf %188, %189 : vector<2x2048xf32>
    %c2048 = arith.constant 2048 : index
    %c0_70 = arith.constant 0 : index
    %191 = vector.load %arg3[%c2048, %c0_70] : memref<4096x32xbf16, #tpu.memory_space<vmem>>, vector<2048x32xbf16>
    %192 = arith.truncf %190 : vector<2x2048xf32> to vector<2x2048xbf16>
    %cst_71 = arith.constant dense<0.000000e+00> : vector<2x32xf32>
    %193 = tpu.matmul %192, %191, %cst_71 {dimension_numbers = #tpu.dot_dimension_numbers<[1], [0], [0], [1], [0, 0, 1, 1], [], []>} : vector<2x2048xbf16>, vector<2048x32xbf16>, vector<2x32xf32> -> vector<2x32xf32>
    %c288 = arith.constant 288 : index
    %c0_72 = arith.constant 0 : index
    %194 = vector.load %arg1[%c288, %c0_72] : memref<296x128xf32, #tpu.memory_space<vmem>>, vector<1x32xf32>
    %195 = vector.broadcast %194 : vector<1x32xf32> to vector<2x32xf32>
    %196 = arith.addf %193, %195 : vector<2x32xf32>
    %197 = arith.addf %181, %196 : vector<2x32xf32>
    %c272 = arith.constant 272 : index
    %c0_73 = arith.constant 0 : index
    %198 = vector.load %arg1[%c272, %c0_73] : memref<296x128xf32, #tpu.memory_space<vmem>>, vector<1x32xf32>
    %c280 = arith.constant 280 : index
    %c0_74 = arith.constant 0 : index
    %199 = vector.load %arg1[%c280, %c0_74] : memref<296x128xf32, #tpu.memory_space<vmem>>, vector<1x32xf32>
    %cst_75 = arith.constant dense<0.000000e+00> : vector<2xf32>
    %200 = vector.multi_reduction <add>, %197, %cst_75 [1] : vector<2x32xf32> to vector<2xf32>
    %201 = vector.shape_cast %200 : vector<2xf32> to vector<2x1xf32>
    %cst_76 = arith.constant 3.200000e+01 : f32
    %202 = vector.broadcast %cst_76 : f32 to vector<2x1xf32>
    %203 = arith.divf %201, %202 : vector<2x1xf32>
    %204 = vector.broadcast %203 : vector<2x1xf32> to vector<2x32xf32>
    %205 = arith.subf %197, %204 : vector<2x32xf32>
    %206 = arith.mulf %205, %205 : vector<2x32xf32>
    %cst_77 = arith.constant dense<0.000000e+00> : vector<2xf32>
    %207 = vector.multi_reduction <add>, %206, %cst_77 [1] : vector<2x32xf32> to vector<2xf32>
    %208 = vector.shape_cast %207 : vector<2xf32> to vector<2x1xf32>
    %cst_78 = arith.constant 3.200000e+01 : f32
    %209 = vector.broadcast %cst_78 : f32 to vector<2x1xf32>
    %210 = arith.divf %208, %209 : vector<2x1xf32>
    %211 = vector.broadcast %203 : vector<2x1xf32> to vector<2x32xf32>
    %212 = arith.subf %197, %211 : vector<2x32xf32>
    %cst_79 = arith.constant 9.99999974E-6 : f32
    %213 = vector.broadcast %cst_79 : f32 to vector<2x1xf32>
    %214 = arith.addf %210, %213 : vector<2x1xf32>
    %215 = math.rsqrt %214 : vector<2x1xf32>
    %216 = vector.broadcast %215 : vector<2x1xf32> to vector<2x32xf32>
    %217 = arith.mulf %212, %216 : vector<2x32xf32>
    %218 = vector.broadcast %198 : vector<1x32xf32> to vector<2x32xf32>
    %219 = arith.mulf %217, %218 : vector<2x32xf32>
    %220 = vector.broadcast %199 : vector<1x32xf32> to vector<2x32xf32>
    %221 = arith.addf %219, %220 : vector<2x32xf32>
    %c16 = arith.constant 16 : index
    %c0_80 = arith.constant 0 : index
    %222 = vector.load %arg1[%c16, %c0_80] : memref<296x128xf32, #tpu.memory_space<vmem>>, vector<32x3xf32>
    %cst_81 = arith.constant dense<0.000000e+00> : vector<2x3xf32>
    %223 = tpu.matmul %221, %222, %cst_81 {dimension_numbers = #tpu.dot_dimension_numbers<[1], [0], [0], [1], [0, 0, 1, 1], [], []>} : vector<2x32xf32>, vector<32x3xf32>, vector<2x3xf32> -> vector<2x3xf32>
    %c48_82 = arith.constant 48 : index
    %c0_83 = arith.constant 0 : index
    %224 = vector.load %arg1[%c48_82, %c0_83] : memref<296x128xf32, #tpu.memory_space<vmem>>, vector<1x3xf32>
    %225 = vector.broadcast %224 : vector<1x3xf32> to vector<2x3xf32>
    %226 = arith.addf %223, %225 : vector<2x3xf32>
    %c0_84 = arith.constant 0 : index
    %c0_85 = arith.constant 0 : index
    %227 = vector.load %arg4[%c0_84, %c0_85] : memref<2x3xf32, #tpu.memory_space<vmem>>, vector<2x3xf32>
    tpu.vector_store %arg4[%c0_84, %c0_85], %226 {strides = array<i32>} : memref<2x3xf32, #tpu.memory_space<vmem>>, vector<2x3xf32>,
    return
  }
}

</mosaic_0001>

<bundles_post_ra>
// kernel: tpu_custom_call.1
= control target key start
LH: loop header
LB: loop body
LE: loop exit
PB: predicated region body
PF: predicated region fallthrough
CT: control target
= control target key end

     0   :  { %vm30_vm0 = vcmask 1043456   ;;  %vm26_vm1 = vcmask 31744   ;;  %v6518_v1 = vmov 0.0   ;;  %vm6519_vm2 = vmmov 0   ;;  %s7986_s0 = inlined_call_operand.vmem [shape: f32[2,4], index: 0, kind: input, shape index: {}]   ;;  %s7987_s1 = inlined_call_operand.vmem [shape: f32[296,128], index: 1, kind: input, shape index: {}]   ;;  %s7988_s2 = inlined_call_operand.vmem [shape: bf16[96,2048], index: 2, kind: input, shape index: {}]   ;;  %s7989_s3 = inlined_call_operand.vmem [shape: bf16[4096,32], index: 3, kind: input, shape index: {}]   ;;  %s7990_s4 = inlined_call_operand.hbm [shape: f32[2,3], index: 4, kind: output, shape index: {}]  }
   0x1   :  { %v20_v0 = vld [vmem:[%s7987_s1] sm:$0xf]  ;;  %6073 = vmatprep.subr.mxu0 %v6518_v1  ;;  %6075 = vmatprep.mubr.msk.f32.mxu0 %vm6519_vm2, %v6518_v1  ;;  %v104_v3 = vld [vmem:[%s7987_s1 + $0x38] sm:$0xff]  ;;  %v6520_v5 = vmov 0.0|0.0   ;;  %v106_v7 = vld [vmem:[%s7987_s1 + $0x48] sm:$0xff] }
   0x2   :  { %v19_v2 = vld [vmem:[%s7986_s0] sm:$0x3]  ;;  %6074 = vmatpush3.msk.msra.mxu0 %vm30_vm0, %v20_v0  ;;  %6173 = vmatprep.subr.bf16.mxu1 %v6520_v5  ;;  %v107_v8 = vld [vmem:[%s7987_s1 + $0x50] sm:$0xff] }
   0x3   :  { %v105_v4 = vld [vmem:[%s7987_s1 + $0x40] sm:$0xff]  ;;  %6076 = vmatmul.mubr.msk.f32.vlgmr.msra.gmra.mrb[0].mxu0 %vm26_vm1, %v19_v2  ;;  %6086 = vmatprep.mubr.msk.f32.mxu1 %vm6519_vm2, %v6518_v1  ;;  %v6177_v9 = vpack.c.bf16 %v107_v8, %v106_v7 }
   0x4   :  { %v6174_v6 = vpack.c.bf16 %v105_v4, %v104_v3  ;;  %6089 = vmatprep.subr.mxu0 %v6518_v1  ;;  %6091 = vmatprep.mubr.msk.f32.mxu0 %vm6519_vm2, %v6518_v1 }
   0x6   :  { %6175 = vmatpush3.bf16.msra.mxu1 %v6174_v6 }
   0x7   :  { %6176 = vmatprep.subr.bf16.mxu1 %v6520_v5 }
   0xa   :  { %6178 = vmatpush3.bf16.msra.mxu1 %v6177_v9 }
   0xb   :  { %6099 = vmatprep.subr.mxu1 %v6518_v1 }
   0xc   :  { %9 = vsyncpa [#allocation3], 0  ;;  %v5303_v10 = vld [vmem:[%s7987_s1 + $0x8] ss:$0 sm:$0xff]  ;;  %vm113_vm3 = vcmask 261120   ;;  %s6521_s30 = smov 112  }
   0xd   :  { %v5306_v14 = vld [vmem:[%s7987_s1 + $0x58] ss:$0 sm:$0xff]  ;;  %s6522_s5 = smov 96   ;;  %s6523_s6 = smov 80   ;;  %vm190_vm4 = vcmask 130048   ;;  %vm266_vm5 = vcmask 9216  }
   0xe   :  { %s6524_s7 = smov 48   ;;  %s6525_s8 = smov 64   ;;  %vm284_vm6 = vcmask 1041408   ;;  %vm280_vm7 = vcmask 15360   ;;  %v529_v47 = vld [vmem:[%s7987_s1 + $0x60] sm:$0xff]  ;;  %v530_v48 = vld [vmem:[%s7987_s1 + $0x68] sm:$0xff] }
   0xf   :  { %v531_v49 = vld [vmem:[%s7987_s1 + $0x70] sm:$0xff]  ;;  %v6180_v50 = vpack.c.bf16 %v530_v48, %v529_v47  ;;  %v532_v51 = vld [vmem:[%s7987_s1 + $0x78] sm:$0xff]  ;;  %s6526_s17 = smov 16   ;;  %v5316_v59 = vld [vmem:[%s7987_s1 + $0x80] ss:$0 sm:$0xff]  ;;  %vm614_vm8 = vcmask 254976  }
  0x10   :  { %v6183_v52 = vpack.c.bf16 %v532_v51, %v531_v49  ;;  %v639_v8 = vld [vmem:[%s7988_s2] sm:$0xff]  ;;  %v644_v51 = vld [vmem:[%s7988_s2 + $0x28] sm:$0xff]  ;;  %vm5287_vm9 = vcmask 17408  }
  0x11   :  { %v647_v9 = vld [vmem:[%s7988_s2 + $0x40] sm:$0xff] }
  0x12   :  { %v643_v49 = vld [vmem:[%s7988_s2 + $0x20] sm:$0xff] }
  0xd6   :  { %v100_v11 = vpop.f32.mrb[0].mxu0 }
  0xd7   :  { %v6586_v12 = vadd.f32 %v5303_v10, %v100_v11  ;;  %v6077_v13 = vpop.f32.mrb[1].mxu0  ;;  %v640_v10 = vld [vmem:[%s7988_s2 + $0x8] sm:$0xff]  ;;  %v5321_v11 = vcombine.high %v639_v8, %v647_v9 }
  0xd8   :  { %v5320_v13 = vcombine.low %v639_v8, %v647_v9 }
  0xd9   :  { %6087 = vmatmul.mubr.msk.f32.vlgmr.msra.gmra.mrb[0].mxu1 %vm113_vm3, %v6586_v12 }
  0xda   :  { %6101 = vmatprep.mubr.msk.f32.mxu1 %vm6519_vm2, %v6518_v1 }
 0x1ac   :  { %v183_v15 = vpop.f32.mrb[0].mxu1 }
 0x1ad   :  { %v184_v16 = vadd.f32 %v5306_v14, %v183_v15  ;;  %v6088_v17 = vpop.f32.mrb[1].mxu1 }
 0x1ae   :  { %v663_v17 = vld [vmem:[%s7988_s2 + $0xc0] sm:$0xff] }
 0x1af   :  { %357 = vrot.lane.b32.xlu1 %v184_v16, %s6521_s30  ;;  %188 = vrot.lane.b32.xlu0 %v184_v16, %s6522_s5 }
 0x1b3   :  { %359 = vrot.lane.b32.xlu0 %v184_v16, %s6523_s6 }
 0x221   :  { %v189_v18 = vpop.permute.xlu0 %188  ;;  %v358_v20 = vpop.permute.xlu1 %357 }
 0x222   :  { %6090 = vmatpush3.xpose.msk.msra.mxu0 %vm190_vm4, %v189_v18  ;;  %v656_v18 = vld [vmem:[%s7988_s2 + $0x88] sm:$0xff] }
 0x223   :  { %6094 = vmatprep.subr.mxu0 %v6518_v1 }
 0x225   :  { %6092 = vmatmul.mubr.msk.f32.vlgmr.msra.gmra.mrb[2].mxu0 %vm190_vm4, %v184_v16  ;;  %v360_v19 = vpop.permute.xlu0 %359 }
 0x226   :  { %6100 = vmatpush3.xpose.msk.msra.mxu1 %vm190_vm4, %v360_v19  ;;  %6096 = vmatprep.mubr.msk.f32.mxu0 %vm6519_vm2, %v6518_v1 }
 0x227   :  { %6179 = vmatprep.subr.bf16.mxu1 %v6520_v5 }
 0x229   :  { %6102 = vmatmul.mubr.msk.f32.vlgmr.msra.gmra.mrb[2].mxu1 %vm190_vm4, %v358_v20  ;;  %v664_v20 = vld [vmem:[%s7988_s2 + $0xc8] sm:$0xff] }
 0x22a   :  { %6117 = vmatprep.mubr.msk.f32.mxu1 %vm6519_vm2, %v6518_v1  ;;  %6181 = vmatpush3.bf16.msra.mxu1 %v6180_v50  ;;  %v651_v50 = vld [vmem:[%s7988_s2 + $0x60] sm:$0xff] }
 0x22b   :  { %6182 = vmatprep.subr.bf16.mxu1 %v6520_v5 }
 0x22e   :  { %6184 = vmatpush3.bf16.msra.mxu1 %v6183_v52  ;;  %v652_v52 = vld [vmem:[%s7988_s2 + $0x68] sm:$0xff] }
 0x2f8   :  { %v261_v21 = vpop.f32.mrb[2].mxu0 }
 0x2f9   :  { %v265_v22 = vmul.f32 0.25, %v261_v21  ;;  %v6093_v23 = vpop.f32.mrb[3].mxu0 }
 0x2fa   :  { %v5339_v23 = vcombine.high %v656_v18, %v664_v20 }
 0x2fb   :  { %v267_v24 = vsel %vm266_vm5, %v265_v22, -inf }
 0x2fc   :  { %v431_v25 = vpop.f32.mrb[2].mxu1  ;;  %268 = vmax.xlane.f32.xlu1 %v267_v24  ;;  %v641_v24 = vld [vmem:[%s7988_s2 + $0x10] sm:$0xff] }
 0x2fd   :  { %v435_v26 = vmul.f32 0.25, %v431_v25  ;;  %v6103_v27 = vpop.f32.mrb[3].mxu1  ;;  %v649_v25 = vld [vmem:[%s7988_s2 + $0x50] sm:$0xff] }
 0x2fe   :  { %v6527_v27 = vmov 0  }
 0x2ff   :  { %v436_v28 = vsel %vm266_vm5, %v435_v26, -inf }
 0x300   :  { %437 = vmax.xlane.f32.xlu0 %v436_v28  ;;  %v5325_v28 = vcombine.high %v641_v24, %v649_v25 }
 0x389   :  { %v269_v29 = vpop.xlane.xlu1 %268 }
 0x38a   :  { %v270_v30 = vsub.f32 %v265_v22, %v269_v29  ;;  %v5338_v22 = vcombine.low %v656_v18, %v664_v20  ;;  %v650_v29 = vld [vmem:[%s7988_s2 + $0x58] sm:$0xff] }
 0x38c   :  { %v271_v31 = vmul.f32 1.442695, %v270_v30  ;;  %v5324_v30 = vcombine.low %v641_v24, %v649_v25  ;;  %v6217_v24 = vld [vmem:[%s7989_s3 + $0x80] sm:$0xff]   ;;  %v6218_v25 = vld [vmem:[%s7989_s3 + $0x48] sm:$0xff]  }
 0x38d   :  { %v438_v32 = vpop.xlane.xlu0 %437 }
 0x38e   :  { %6470 = vpow2.f32 %v271_v31  ;;  %v439_v33 = vsub.f32 %v435_v26, %v438_v32  ;;  %v642_v26 = vld [vmem:[%s7988_s2 + $0x18] sm:$0xff] }
 0x38f   :  { %v5326_v31 = vcombine.low %v642_v26, %v650_v29  ;;  %v5327_v32 = vcombine.high %v642_v26, %v650_v29  ;;  %v6219_v26 = vld [vmem:[%s7989_s3 + $0xc8] sm:$0xff]  }
 0x390   :  { %v440_v34 = vmul.f32 1.442695, %v439_v33  ;;  %v6221_v29 = vld [vmem:[%s7989_s3 + $0x88] sm:$0xff]  }
 0x392   :  { %6472 = vpow2.f32 %v440_v34 }
 0x398   :  { %v6471_v35 = vpop.eup %6470 }
 0x399   :  { %v273_v36 = vsel %vm266_vm5, %v6471_v35, 0.0 }
 0x39a   :  { %274 = vadd.xlane.f32.xlu0 %v273_v36 }
 0x39c   :  { %v6473_v37 = vpop.eup %6472 }
 0x39d   :  { %v442_v38 = vsel %vm266_vm5, %v6473_v37, 0.0 }
 0x39e   :  { %443 = vadd.xlane.f32.xlu1 %v442_v38 }
 0x3af   :  { %447 = vrot.lane.b32.xlu1 %v184_v16, %s6524_s7 }
 0x3b0   :  { %278 = vrot.lane.b32.xlu0 %v184_v16, %s6525_s8  ;;  %v655_v16 = vld [vmem:[%s7988_s2 + $0x80] sm:$0xff] }
 0x3b1   :  { %v5337_v19 = vcombine.high %v655_v16, %v663_v17  ;;  %v5336_v21 = vcombine.low %v655_v16, %v663_v17 }
 0x427   :  { %v275_v39 = vpop.xlane.xlu0 %274 }
 0x428   :  { %6474 = vrcp.f32 %v275_v39  ;;  %v5319_v39 = vld [vmem:[%s7987_s1 + $0x90] ss:$0 sm:$0xff] }
 0x42b   :  { %v279_v40 = vpop.permute.xlu0 %278  ;;  %v444_v41 = vpop.xlane.xlu1 %443 }
 0x42c   :  { %6476 = vrcp.f32 %v444_v41  ;;  %6095 = vmatpush3.msk.msra.mxu0 %vm284_vm6, %v279_v40  ;;  %v657_v41 = vld [vmem:[%s7988_s2 + $0x90] sm:$0xff] }
 0x42d   :  { %6104 = vmatprep.subr.mxu0 %v6518_v1 }
 0x42f   :  { %v448_v44 = vpop.permute.xlu1 %447 }
 0x432   :  { %v6475_v42 = vpop.eup %6474 }
 0x433   :  { %v277_v43 = vmul.f32 %v6475_v42, %v6471_v35  ;;  %v665_v42 = vld [vmem:[%s7988_s2 + $0xd0] sm:$0xff] }
 0x434   :  { %v5341_v47 = vcombine.high %v657_v41, %v665_v42 }
 0x435   :  { %6097 = vmatmul.mubr.msk.f32.vlgmr.msra.gmra.mrb[4].mxu0 %vm280_vm7, %v277_v43  ;;  %v658_v43 = vld [vmem:[%s7988_s2 + $0x98] sm:$0xff] }
 0x436   :  { %v6477_v45 = vpop.eup %6476  ;;  %6105 = vmatpush3.msk.msra.mxu0 %vm284_vm6, %v448_v44  ;;  %6106 = vmatprep.mubr.msk.f32.mxu0 %vm6519_vm2, %v6518_v1  ;;  %v666_v44 = vld [vmem:[%s7988_s2 + $0xd8] sm:$0xff] }
 0x437   :  { %v446_v46 = vmul.f32 %v6477_v45, %v6473_v37  ;;  %923 = vmatprep.subr.bf16.mxu0 %v5321_v11  ;;  %v5318_v37 = vld [vmem:[%s7987_s1 + $0x88] ss:$0 sm:$0xff]  ;;  %v5343_v48 = vcombine.high %v658_v43, %v666_v44  ;;  %v661_v11 = vld [vmem:[%s7988_s2 + $0xb0] sm:$0xff] }
 0x439   :  { %6107 = vmatmul.mubr.msk.f32.vlgmr.msra.gmra.mrb[6].mxu0 %vm280_vm7, %v446_v46 }
 0x43a   :  { %924 = vmatpush1.bf16.msra.mxu0 %v5320_v13  ;;  %955 = vmatprep.mubr.bf16.mxu0 %v6527_v27  ;;  %v662_v13 = vld [vmem:[%s7988_s2 + $0xb8] sm:$0xff] }
 0x43b   :  { %925 = vmatprep.subr.bf16.mxu0 %v5337_v19 }
 0x43e   :  { %926 = vmatpush1.bf16.msra.mxu0 %v5336_v21  ;;  %v6214_v21 = vld [vmem:[%s7989_s3 + $0x40] sm:$0xff]  }
 0x43f   :  { %1005 = vmatprep.subr.bf16.mxu0 %v5325_v28  ;;  %v6220_v28 = vld [vmem:[%s7989_s3 + $0x8] sm:$0xff]  }
 0x508   :  { %v353_v53 = vpop.f32.mrb[4].mxu0 }
 0x509   :  { %v6098_v54 = vpop.f32.mrb[5].mxu0 }
 0x50a   :  { %v5342_v54 = vcombine.low %v658_v43, %v666_v44  ;;  %v6235_v43 = vld [vmem:[%s7989_s3 + $0xe8] sm:$0xff]  }
 0x50b   :  { %v6236_v44 = vld [vmem:[%s7989_s3 + $0x28] sm:$0xff]  }
 0x50c   :  { %v520_v55 = vpop.f32.mrb[6].mxu0 }
 0x50d   :  { %525 = vrot.lane.b32.xlu1 %v520_v55, %s6526_s17  ;;  %v6108_v56 = vpop.f32.mrb[7].mxu0  ;;  %v5329_v55 = vcombine.high %v643_v49, %v651_v50 }
 0x50e   :  { %v5331_v56 = vcombine.high %v644_v51, %v652_v52 }
 0x57f   :  { %v526_v57 = vpop.permute.xlu1 %525 }
 0x580   :  { %v528_v58 = vsel %vm190_vm4, %v353_v53, %v526_v57  ;;  %v5340_v53 = vcombine.low %v657_v41, %v665_v42  ;;  %v659_v57 = vld [vmem:[%s7988_s2 + $0xa0] sm:$0xff]  ;;  %v6234_v42 = vld [vmem:[%s7989_s3 + $0x68] sm:$0xff]  }
 0x581   :  { %6118 = vmatmul.mubr.msk.f32.vlgmr.msra.gmra.mrb[4].mxu1 %vm113_vm3, %v528_v58  ;;  %v667_v58 = vld [vmem:[%s7988_s2 + $0xe0] sm:$0xff] }
 0x582   :  { %996 = vmatprep.mubr.bf16.mxu1 %v6527_v27  ;;  %v6233_v41 = vld [vmem:[%s7989_s3 + $0xa0] sm:$0xff]  }
 0x654   :  { %v607_v60 = vpop.f32.mrb[4].mxu1 }
 0x655   :  { %v608_v61 = vadd.f32 %v5316_v59, %v607_v60  ;;  %v6119_v62 = vpop.f32.mrb[5].mxu1  ;;  %v660_v59 = vld [vmem:[%s7988_s2 + $0xa8] sm:$0xff] }
 0x656   :  { %v668_v60 = vld [vmem:[%s7988_s2 + $0xe8] sm:$0xff]  ;;  %v5330_v62 = vcombine.low %v644_v51, %v652_v52  ;;  %v6242_v51 = vld [vmem:[%s7989_s3 + $0x78] sm:$0xff]  }
 0x657   :  { %v611_v63 = vadd.f32 %v608_v61, %v6586_v12  ;;  %v648_v12 = vld [vmem:[%s7988_s2 + $0x48] sm:$0xff]  ;;  %v5328_v61 = vcombine.low %v643_v49, %v651_v50  ;;  %v5346_v8 = vcombine.low %v660_v59, %v668_v60  ;;  %v6240_v49 = vld [vmem:[%s7989_s3 + $0x30] sm:$0xff]   ;;  %v6243_v52 = vld [vmem:[%s7989_s3 + $0xf8] sm:$0xff]  }
 0x658   :  { %v5322_v14 = vcombine.low %v640_v10, %v648_v12  ;;  %v5323_v15 = vcombine.high %v640_v10, %v648_v12  ;;  %v669_v12 = vld [vmem:[%s7988_s2 + $0xf0] sm:$0xff] }
 0x659   :  { %v615_v0 = vsel %vm614_vm8, %v611_v63, 0.0  ;;  %v5349_v17 = vcombine.high %v661_v11, %v669_v12  ;;  %v5348_v19 = vcombine.low %v661_v11, %v669_v12  ;;  %v6241_v50 = vld [vmem:[%s7989_s3 + $0xb0] sm:$0xff]  }
 0x65a   :  { %616 = vadd.xlane.f32.xlu0 %v615_v0  ;;  %964 = vmatprep.subr.bf16.mxu1 %v5323_v15  ;;  %v5347_v0 = vcombine.high %v660_v59, %v668_v60  ;;  %v671_v59 = vld [vmem:[%s7988_s2 + $0x100] sm:$0x11]  ;;  %v672_v60 = vld [vmem:[%s7988_s2 + $0x108] sm:$0x11] }
 0x65b   :  { %965 = vmatpush1.bf16.msra.mxu1 %v5322_v14  ;;  %v670_v14 = vld [vmem:[%s7988_s2 + $0xf8] sm:$0xff] }
 0x65c   :  { %966 = vmatprep.subr.bf16.mxu1 %v5339_v23  ;;  %v5351_v18 = vcombine.high %v662_v13, %v670_v14  ;;  %v5350_v20 = vcombine.low %v662_v13, %v670_v14  ;;  %v6216_v23 = vld [vmem:[%s7989_s3] sm:$0xff]  }
 0x65f   :  { %967 = vmatpush1.bf16.msra.mxu1 %v5338_v22  ;;  %v6215_v22 = vld [vmem:[%s7989_s3 + $0xc0] sm:$0xff]  }
 0x660   :  { %1046 = vmatprep.subr.bf16.mxu1 %v5327_v32  ;;  %v6224_v32 = vld [vmem:[%s7989_s3 + $0x10] sm:$0xff]  }
 0x6e7   :  { %v617_v2 = vpop.xlane.xlu0 %616 }
 0x6e8   :  { %v619_v3 = vmul.f32 0.03125, %v617_v2  ;;  %v645_v2 = vld [vmem:[%s7988_s2 + $0x30] sm:$0xff] }
 0x6ea   :  { %v620_v4 = vsub.f32 %v611_v63, %v619_v3  ;;  %v5345_v63 = vcombine.high %v659_v57, %v667_v58  ;;  %v653_v3 = vld [vmem:[%s7988_s2 + $0x70] sm:$0xff] }
 0x6eb   :  { %v5333_v9 = vcombine.high %v645_v2, %v653_v3  ;;  %v5332_v15 = vcombine.low %v645_v2, %v653_v3  ;;  %v682_v2 = vunpack.c.h.bf16 %v672_v60 }
 0x6ec   :  { %v621_v6 = vmul.f32 %v620_v4, %v620_v4 }
 0x6ee   :  { %v622_v7 = vsel %vm614_vm8, %v621_v6, 0.0  ;;  %v654_v6 = vld [vmem:[%s7988_s2 + $0x78] sm:$0xff] }
 0x6ef   :  { %623 = vadd.xlane.f32.xlu1 %v622_v7  ;;  %v5344_v7 = vcombine.low %v659_v57, %v667_v58  ;;  %v696_v57 = vlaneseq }
 0x6f1   :  { %v697_v58 = vshrl.u32 %v696_v57, 7 }
 0x77c   :  { %v624_v33 = vpop.xlane.xlu1 %623 }
 0x77d   :  { %v625_v34 = vmul.f32 0.03125, %v624_v33  ;;  %v6225_v33 = vld [vmem:[%s7989_s3 + $0x90] sm:$0xff]  }
 0x77f   :  { %v626_v35 = vadd.f32 1e-05, %v625_v34  ;;  %v6226_v34 = vld [vmem:[%s7989_s3 + $0x58] sm:$0xff]  }
 0x781   :  { %6478 = vrsqrt.f32 %v626_v35  ;;  %v6227_v35 = vld [vmem:[%s7989_s3 + $0xd8] sm:$0xff]  }
 0x78b   :  { %v6479_v36 = vpop.eup %6478 }
 0x78c   :  { %v628_v38 = vmul.f32 %v6479_v36, %v620_v4  ;;  %v646_v4 = vld [vmem:[%s7988_s2 + $0x38] sm:$0xff] }
 0x78d   :  { %v5335_v10 = vcombine.high %v646_v4, %v654_v6  ;;  %v5334_v16 = vcombine.low %v646_v4, %v654_v6  ;;  %v6228_v36 = vld [vmem:[%s7989_s3 + $0x18] sm:$0xff]  }
 0x78e   :  { %v633_v40 = vmul.f32 %v5318_v37, %v628_v38  ;;  %v6229_v37 = vld [vmem:[%s7989_s3 + $0x98] sm:$0xff]   ;;  %v6230_v38 = vld [vmem:[%s7989_s3 + $0x60] sm:$0xff]  }
 0x790   :  { %v6699_v45 = vadd.f32 %v5319_v39, %v633_v40  ;;  %v6231_v39 = vld [vmem:[%s7989_s3 + $0xe0] sm:$0xff]  }
 0x791   :  { %v6232_v40 = vld [vmem:[%s7989_s3 + $0x20] sm:$0xff]  }
 0x792   :  { %v6703_v46 = vpack.c.bf16 %v6699_v45, %v6699_v45 }
 0x794   :  { %5352 = vmatmul.mubr.msk.bf16.vlgmr.msra.gmra.mrb[8].mxu0 %vm113_vm3, %v6703_v46  ;;  %5353 = vmatmul.mubr.msk.bf16.vlgmr.msra.gmra.mrb[8].mxu1 %vm113_vm3, %v6703_v46 }
 0x795   :  { %1006 = vmatpush1.bf16.msra.mxu0 %v5324_v30  ;;  %1047 = vmatpush1.bf16.msra.mxu1 %v5326_v31  ;;  %v6222_v30 = vld [vmem:[%s7989_s3 + $0x50] sm:$0xff]  }
 0x796   :  { %1007 = vmatprep.subr.bf16.mxu0 %v5341_v47  ;;  %1048 = vmatprep.subr.bf16.mxu1 %v5343_v48  ;;  %v6223_v31 = vld [vmem:[%s7989_s3 + $0xd0] sm:$0xff]  }
 0x797   :  { %1037 = vmatprep.mubr.bf16.mxu0 %v6527_v27  ;;  %1078 = vmatprep.mubr.bf16.mxu1 %v6527_v27  ;;  %v6238_v47 = vld [vmem:[%s7989_s3 + $0x70] sm:$0xff]  }
 0x798   :  { %v6239_v48 = vld [vmem:[%s7989_s3 + $0xf0] sm:$0xff]  }
 0x799   :  { %1008 = vmatpush1.bf16.msra.mxu0 %v5340_v53  ;;  %1049 = vmatpush1.bf16.msra.mxu1 %v5342_v54  ;;  %v6244_v53 = vld [vmem:[%s7989_s3 + $0x38] sm:$0xff]  }
 0x79a   :  { %1087 = vmatprep.subr.bf16.mxu0 %v5329_v55  ;;  %1128 = vmatprep.subr.bf16.mxu1 %v5331_v56  ;;  %v6245_v54 = vld [vmem:[%s7989_s3 + $0xb8] sm:$0xff]   ;;  %v6246_v55 = vld [vmem:[%s7989_s3 + $0x140] sm:$0xff]  }
 0x79b   :  { %v6247_v56 = vld [vmem:[%s7989_s3 + $0x1c0] sm:$0xff]  }
 0x79c   :  { %5354 = vmatmul.mubr.msk.bf16.vlgmr.msra.gmra.mrb[12].mxu0 %vm113_vm3, %v6703_v46  ;;  %5355 = vmatmul.mubr.msk.bf16.vlgmr.msra.gmra.mrb[12].mxu1 %vm113_vm3, %v6703_v46 }
 0x79d   :  { %1088 = vmatpush1.bf16.msra.mxu0 %v5328_v61  ;;  %1129 = vmatpush1.bf16.msra.mxu1 %v5330_v62  ;;  %v679_v61 = vunpack.c.l.bf16 %v671_v59  ;;  %v6883_v62 = vsub.s32 0, %v697_v58  ;;  %v6256_v58 = vld [vmem:[%s7989_s3 + $0x110] sm:$0xff]  }
 0x79e   :  { %1089 = vmatprep.subr.bf16.mxu0 %v5345_v63  ;;  %1130 = vmatprep.subr.bf16.mxu1 %v5347_v0  ;;  %v681_v63 = vunpack.c.l.bf16 %v672_v60  ;;  %v680_v0 = vunpack.c.h.bf16 %v671_v59  ;;  %v6257_v59 = vld [vmem:[%s7989_s3 + $0x190] sm:$0xff]   ;;  %v6258_v60 = vld [vmem:[%s7989_s3 + $0x158] sm:$0xff]  }
 0x79f   :  { %1119 = vmatprep.mubr.bf16.mxu0 %v6527_v27  ;;  %1160 = vmatprep.mubr.bf16.mxu1 %v6527_v27  ;;  %v699_v3 = vrot.slane %v679_v61, %v6883_v62  ;;  %v6259_v61 = vld [vmem:[%s7989_s3 + $0x1d8] sm:$0xff]  }
 0x7a0   :  { %v707_v4 = vrot.slane %v681_v63, %v6883_v62  ;;  %v703_v6 = vrot.slane %v680_v0, %v6883_v62 }
 0x7a1   :  { %1090 = vmatpush1.bf16.msra.mxu0 %v5344_v7  ;;  %1131 = vmatpush1.bf16.msra.mxu1 %v5346_v8  ;;  %v711_v7 = vrot.slane %v682_v2, %v6883_v62  ;;  %v6892_v8 = vld [vmem:[%s7988_s2 + $0x110] sm:$0x11] }
 0x7a2   :  { %1169 = vmatprep.subr.bf16.mxu0 %v5333_v9  ;;  %1210 = vmatprep.subr.bf16.mxu1 %v5335_v10  ;;  %v6897_v9 = vld [vmem:[%s7988_s2 + $0x118] sm:$0x11] }
 0x7a4   :  { %5356 = vmatmul.mubr.msk.bf16.vlgmr.msra.gmra.mrb[16].mxu0 %vm113_vm3, %v6703_v46  ;;  %5357 = vmatmul.mubr.msk.bf16.vlgmr.msra.gmra.mrb[16].mxu1 %vm113_vm3, %v6703_v46 }
 0x7a5   :  { %1170 = vmatpush1.bf16.msra.mxu0 %v5332_v15  ;;  %1211 = vmatpush1.bf16.msra.mxu1 %v5334_v16 }
 0x7a6   :  { %1171 = vmatprep.subr.bf16.mxu0 %v5349_v17  ;;  %1212 = vmatprep.subr.bf16.mxu1 %v5351_v18 }
 0x7a7   :  { %1201 = vmatprep.mubr.bf16.mxu0 %v6527_v27  ;;  %1242 = vmatprep.mubr.bf16.mxu1 %v6527_v27 }
 0x7a9   :  { %1172 = vmatpush1.bf16.msra.mxu0 %v5348_v19  ;;  %1213 = vmatpush1.bf16.msra.mxu1 %v5350_v20  ;;  %v684_v20 = vunpack.c.h.bf16 %v6892_v8 }
 0x7aa   :  { %5698 = vmatprep.subr.bf16.mxu0 %v6214_v21  ;;  %5720 = vmatprep.subr.bf16.mxu1 %v6215_v22  ;;  %v686_v21 = vunpack.c.h.bf16 %v6897_v9 }
 0x7ac   :  { %5358 = vmatmul.mubr.msk.bf16.vlgmr.msra.gmra.mrb[20].mxu0 %vm113_vm3, %v6703_v46  ;;  %5359 = vmatmul.mubr.msk.bf16.vlgmr.msra.gmra.mrb[20].mxu1 %vm113_vm3, %v6703_v46  ;;  %v6237_v46 = vld [vmem:[%s7989_s3 + $0xa8] sm:$0xff]  }
 0x7ad   :  { %5699 = vmatpush3.bf16.msra.mxu0 %v6216_v23  ;;  %5721 = vmatpush3.bf16.msra.mxu1 %v6217_v24 }
 0x7ae   :  { %5700 = vmatprep.subr.bf16.mxu0 %v6218_v25  ;;  %5722 = vmatprep.subr.bf16.mxu1 %v6219_v26 }
 0x7b1   :  { %5701 = vmatpush3.bf16.msra.mxu0 %v6220_v28  ;;  %5723 = vmatpush3.bf16.msra.mxu1 %v6221_v29 }
 0x7b2   :  { %5702 = vmatprep.subr.bf16.mxu0 %v6222_v30  ;;  %5724 = vmatprep.subr.bf16.mxu1 %v6223_v31  ;;  %v719_v31 = vrot.slane %v684_v20, %v6883_v62  ;;  %v685_v20 = vunpack.c.l.bf16 %v6897_v9 }
 0x7b5   :  { %5703 = vmatpush3.bf16.msra.mxu0 %v6224_v32  ;;  %5725 = vmatpush3.bf16.msra.mxu1 %v6225_v33  ;;  %v727_v32 = vrot.slane %v686_v21, %v6883_v62  ;;  %v6248_v33 = vld [vmem:[%s7989_s3 + $0x100] sm:$0xff]   ;;  %v6266_v21 = vld [vmem:[%s7989_s3 + $0x168] sm:$0xff]  }
 0x7b6   :  { %5704 = vmatprep.subr.bf16.mxu0 %v6226_v34  ;;  %5726 = vmatprep.subr.bf16.mxu1 %v6227_v35  ;;  %v6249_v34 = vld [vmem:[%s7989_s3 + $0x180] sm:$0xff]  }
 0x7b9   :  { %5705 = vmatpush3.bf16.msra.mxu0 %v6228_v36  ;;  %5727 = vmatpush3.bf16.msra.mxu1 %v6229_v37  ;;  %v6250_v37 = vld [vmem:[%s7989_s3 + $0x148] sm:$0xff]  }
 0x7ba   :  { %5706 = vmatprep.subr.bf16.mxu0 %v6230_v38  ;;  %5728 = vmatprep.subr.bf16.mxu1 %v6231_v39  ;;  %v6251_v38 = vld [vmem:[%s7989_s3 + $0x1c8] sm:$0xff]  }
 0x7bd   :  { %5707 = vmatpush3.bf16.msra.mxu0 %v6232_v40  ;;  %5729 = vmatpush3.bf16.msra.mxu1 %v6233_v41 }
 0x7be   :  { %5708 = vmatprep.subr.bf16.mxu0 %v6234_v42  ;;  %5730 = vmatprep.subr.bf16.mxu1 %v6235_v43 }
 0x7c1   :  { %5709 = vmatpush3.bf16.msra.mxu0 %v6236_v44  ;;  %5731 = vmatpush3.bf16.msra.mxu1 %v6237_v46 }
 0x7c2   :  { %5710 = vmatprep.subr.bf16.mxu0 %v6238_v47  ;;  %5732 = vmatprep.subr.bf16.mxu1 %v6239_v48  ;;  %v6252_v48 = vld [vmem:[%s7989_s3 + $0x108] sm:$0xff]  }
 0x7c5   :  { %5711 = vmatpush3.bf16.msra.mxu0 %v6240_v49  ;;  %5733 = vmatpush3.bf16.msra.mxu1 %v6241_v50  ;;  %v6253_v49 = vld [vmem:[%s7989_s3 + $0x188] sm:$0xff]  }
 0x7c6   :  { %5712 = vmatprep.subr.bf16.mxu0 %v6242_v51  ;;  %5734 = vmatprep.subr.bf16.mxu1 %v6243_v52  ;;  %v6254_v52 = vld [vmem:[%s7989_s3 + $0x150] sm:$0xff]  }
 0x7c9   :  { %5713 = vmatpush3.bf16.msra.mxu0 %v6244_v53  ;;  %5735 = vmatpush3.bf16.msra.mxu1 %v6245_v54  ;;  %v6255_v53 = vld [vmem:[%s7989_s3 + $0x1d0] sm:$0xff]  }
 0x7ca   :  { %5742 = vmatprep.subr.bf16.mxu0 %v6246_v55  ;;  %5764 = vmatprep.subr.bf16.mxu1 %v6247_v56 }
 0x867   :  { %v957_v10 = vpop.f32.mrb[8].mxu0  ;;  %v998_v11 = vpop.f32.mrb[8].mxu1 }
 0x868   :  { %v958_v12 = vadd.f32 %v957_v10, %v699_v3  ;;  %v999_v13 = vadd.f32 %v998_v11, %v707_v4  ;;  %v959_v14 = vpop.f32.mrb[9].mxu0  ;;  %v1000_v15 = vpop.f32.mrb[9].mxu1  ;;  %v6261_v10 = vld [vmem:[%s7989_s3 + $0x198] sm:$0xff]  }
 0x869   :  { %v960_v16 = vadd.f32 %v959_v14, %v703_v6  ;;  %v1001_v17 = vadd.f32 %v1000_v15, %v711_v7  ;;  %v961_v18 = vpop.f32.mrb[10].mxu0  ;;  %v1002_v19 = vpop.f32.mrb[10].mxu1  ;;  %v6260_v7 = vld [vmem:[%s7989_s3 + $0x118] sm:$0xff]   ;;  %v6263_v14 = vld [vmem:[%s7989_s3 + $0x1e0] sm:$0xff]  }
 0x86a   :  { %v1251_v22 = vmax.f32 %v958_v12, 0.0  ;;  %v1253_v23 = vmax.f32 %v999_v13, 0.0  ;;  %v962_v24 = vpop.f32.mrb[11].mxu0  ;;  %v1003_v25 = vpop.f32.mrb[11].mxu1  ;;  %v6262_v13 = vld [vmem:[%s7989_s3 + $0x160] sm:$0xff]   ;;  %v683_v19 = vunpack.c.l.bf16 %v6892_v8 }
 0x86b   :  { %v1252_v26 = vmax.f32 %v960_v16, 0.0  ;;  %v1254_v28 = vmax.f32 %v1001_v17, 0.0  ;;  %v6962_v15 = vld [vmem:[%s7988_s2 + $0x120] sm:$0x11]  ;;  %v6967_v16 = vld [vmem:[%s7988_s2 + $0x128] sm:$0x11] }
 0x86c   :  { %v1523_v35 = vpack.c.bf16 %v1251_v22, %v1251_v22  ;;  %v1525_v36 = vpack.c.bf16 %v1253_v23, %v1253_v23  ;;  %v6264_v17 = vld [vmem:[%s7989_s3 + $0x120] sm:$0xff]   ;;  %v6267_v22 = vld [vmem:[%s7989_s3 + $0x1e8] sm:$0xff]   ;;  %v688_v23 = vunpack.c.h.bf16 %v6962_v15  ;;  %v690_v8 = vunpack.c.h.bf16 %v6967_v16 }
 0x86d   :  { %v1524_v29 = vpack.c.bf16 %v1252_v26, %v1252_v26  ;;  %v1526_v30 = vpack.c.bf16 %v1254_v28, %v1254_v28  ;;  %v6265_v18 = vld [vmem:[%s7989_s3 + $0x1a0] sm:$0xff]  }
 0x86f   :  { %v6915_v39 = vpop.f32.mrb[12].mxu0  ;;  %v6917_v40 = vpop.f32.mrb[12].mxu1  ;;  %2344 = vmatprep.mubr.bf16.mxu0 %v1524_v29  ;;  %2384 = vmatprep.mubr.bf16.mxu1 %v1526_v30  ;;  %v6268_v30 = vld [vmem:[%s7989_s3 + $0x128] sm:$0xff]  }
 0x870   :  { %v1041_v41 = vpop.f32.mrb[13].mxu0  ;;  %v1082_v42 = vpop.f32.mrb[13].mxu1  ;;  %2345 = vmatmul.mubr.bf16.vlgmr.msra.gmra.mrb[24].mxu0 %v1523_v35  ;;  %2385 = vmatmul.mubr.bf16.vlgmr.msra.gmra.mrb[24].mxu1 %v1525_v36  ;;  %v6270_v36 = vld [vmem:[%s7989_s3 + $0x170] sm:$0xff]  }
 0x871   :  { %v1042_v43 = vadd.f32 %v1041_v41, %v719_v31  ;;  %v1083_v44 = vadd.f32 %v1082_v42, %v727_v32  ;;  %5743 = vmatpush3.bf16.msra.mxu0 %v6248_v33  ;;  %5765 = vmatpush3.bf16.msra.mxu1 %v6249_v34  ;;  %v1043_v46 = vpop.f32.mrb[14].mxu0  ;;  %v1084_v47 = vpop.f32.mrb[14].mxu1  ;;  %v6269_v31 = vld [vmem:[%s7989_s3 + $0x1a8] sm:$0xff]   ;;  %v715_v32 = vrot.slane %v683_v19, %v6883_v62  ;;  %v6272_v42 = vld [vmem:[%s7989_s3 + $0x130] sm:$0xff]   ;;  %v6293_v19 = vld [vmem:[%s7989_s3 + $0x298] sm:$0xff]  }
 0x872   :  { %v1044_v50 = vpop.f32.mrb[15].mxu0  ;;  %v1085_v51 = vpop.f32.mrb[15].mxu1  ;;  %5744 = vmatprep.subr.bf16.mxu0 %v6250_v37  ;;  %5766 = vmatprep.subr.bf16.mxu1 %v6251_v38  ;;  %v723_v33 = vrot.slane %v685_v20, %v6883_v62  ;;  %v6271_v37 = vld [vmem:[%s7989_s3 + $0x1f0] sm:$0xff]   ;;  %v735_v38 = vrot.slane %v688_v23, %v6883_v62  ;;  %v743_v41 = vrot.slane %v690_v8, %v6883_v62  ;;  %v6274_v47 = vld [vmem:[%s7989_s3 + $0x178] sm:$0xff]   ;;  %v6294_v20 = vld [vmem:[%s7989_s3 + $0x260] sm:$0xff]   ;;  %v687_v8 = vunpack.c.l.bf16 %v6962_v15 }
 0x873   :  { %v1256_v54 = vmax.f32 %v1042_v43, 0.0  ;;  %v1258_v55 = vmax.f32 %v1083_v44, 0.0  ;;  %v6273_v43 = vld [vmem:[%s7989_s3 + $0x1b0] sm:$0xff]   ;;  %v1040_v44 = vadd.f32 %v6915_v39, %v715_v32  ;;  %v6276_v39 = vld [vmem:[%s7989_s3 + $0x138] sm:$0xff]   ;;  %v6296_v23 = vld [vmem:[%s7989_s3 + $0x220] sm:$0xff]  }
 0x874   :  { %v1081_v46 = vadd.f32 %v6917_v40, %v723_v33  ;;  %v6277_v40 = vld [vmem:[%s7989_s3 + $0x1b8] sm:$0xff]   ;;  %v6299_v15 = vld [vmem:[%s7989_s3 + $0x2e8] sm:$0xff]  }
 0x875   :  { %v1528_v56 = vpack.c.bf16 %v1256_v54, %v1256_v54  ;;  %v1530_v57 = vpack.c.bf16 %v1258_v55, %v1258_v55  ;;  %5745 = vmatpush3.bf16.msra.mxu0 %v6252_v48  ;;  %5767 = vmatpush3.bf16.msra.mxu1 %v6253_v49  ;;  %v6275_v48 = vld [vmem:[%s7989_s3 + $0x1f8] sm:$0xff]   ;;  %v1255_v51 = vmax.f32 %v1040_v44, 0.0  ;;  %v6279_v54 = vld [vmem:[%s7989_s3 + $0x2c0] sm:$0xff]  }
 0x876   :  { %5746 = vmatprep.subr.bf16.mxu0 %v6254_v52  ;;  %5768 = vmatprep.subr.bf16.mxu1 %v6255_v53  ;;  %v1257_v52 = vmax.f32 %v1081_v46, 0.0  ;;  %v6278_v53 = vld [vmem:[%s7989_s3 + $0x240] sm:$0xff]   ;;  %v6305_v46 = vld [vmem:[%s7989_s3 + $0x2b0] sm:$0xff]  }
 0x877   :  { %v6943_v63 = vpop.f32.mrb[16].mxu0  ;;  %v6945_v0 = vpop.f32.mrb[16].mxu1  ;;  %2424 = vmatprep.mubr.bf16.mxu0 %v1528_v56  ;;  %2464 = vmatprep.mubr.bf16.mxu1 %v1530_v57  ;;  %v6280_v57 = vld [vmem:[%s7989_s3 + $0x200] sm:$0xff]  }
 0x878   :  { %v1123_v2 = vpop.f32.mrb[17].mxu0  ;;  %v1164_v3 = vpop.f32.mrb[17].mxu1 }
 0x879   :  { %5747 = vmatpush3.bf16.msra.mxu0 %v6256_v58  ;;  %5769 = vmatpush3.bf16.msra.mxu1 %v6257_v59  ;;  %v1125_v4 = vpop.f32.mrb[18].mxu0  ;;  %v1166_v6 = vpop.f32.mrb[18].mxu1  ;;  %v1124_v49 = vadd.f32 %v1123_v2, %v735_v38  ;;  %v1165_v50 = vadd.f32 %v1164_v3, %v743_v41  ;;  %v1527_v58 = vpack.c.bf16 %v1255_v51, %v1255_v51  ;;  %v6282_v2 = vld [vmem:[%s7989_s3 + $0x248] sm:$0xff]   ;;  %v6303_v38 = vld [vmem:[%s7989_s3 + $0x2f0] sm:$0xff]   ;;  %v6310_v51 = vld [vmem:[%s7989_s3 + $0x340] sm:$0xff]  }
 0x87a   :  { %v1126_v11 = vpop.f32.mrb[19].mxu0  ;;  %v1167_v12 = vpop.f32.mrb[19].mxu1  ;;  %5748 = vmatprep.subr.bf16.mxu0 %v6258_v60  ;;  %5770 = vmatprep.subr.bf16.mxu1 %v6259_v61  ;;  %v1529_v59 = vpack.c.bf16 %v1257_v52, %v1257_v52  ;;  %v6281_v60 = vld [vmem:[%s7989_s3 + $0x280] sm:$0xff]   ;;  %v6283_v3 = vld [vmem:[%s7989_s3 + $0x2c8] sm:$0xff]  }
 0x87b   :  { %v1260_v55 = vmax.f32 %v1124_v49, 0.0  ;;  %v1262_v56 = vmax.f32 %v1165_v50, 0.0  ;;  %v6284_v6 = vld [vmem:[%s7989_s3 + $0x208] sm:$0xff]   ;;  %v6287_v11 = vld [vmem:[%s7989_s3 + $0x2d0] sm:$0xff]   ;;  %v6307_v49 = vld [vmem:[%s7989_s3 + $0x2f8] sm:$0xff]  }
 0x87c   :  { %v6288_v12 = vld [vmem:[%s7989_s3 + $0x210] sm:$0xff]  }
 0x87d   :  { %5749 = vmatpush3.bf16.msra.mxu0 %v6260_v7  ;;  %5771 = vmatpush3.bf16.msra.mxu1 %v6261_v10  ;;  %v1532_v61 = vpack.c.bf16 %v1260_v55, %v1260_v55  ;;  %v1534_v4 = vpack.c.bf16 %v1262_v56, %v1262_v56  ;;  %v6285_v7 = vld [vmem:[%s7989_s3 + $0x288] sm:$0xff]   ;;  %v6286_v10 = vld [vmem:[%s7989_s3 + $0x250] sm:$0xff]   ;;  %v6313_v56 = vld [vmem:[%s7989_s3 + $0x380] sm:$0xff]  }
 0x87e   :  { %5750 = vmatprep.subr.bf16.mxu0 %v6262_v13  ;;  %5772 = vmatprep.subr.bf16.mxu1 %v6263_v14  ;;  %v6289_v13 = vld [vmem:[%s7989_s3 + $0x290] sm:$0xff]   ;;  %v6290_v14 = vld [vmem:[%s7989_s3 + $0x258] sm:$0xff]  }
 0x87f   :  { %v6984_v24 = vpop.f32.mrb[20].mxu0  ;;  %v6986_v25 = vpop.f32.mrb[20].mxu1 }
 0x880   :  { %v6989_v26 = vpop.f32.mrb[21].mxu0  ;;  %v6991_v9 = vpop.f32.mrb[21].mxu1 }
 0x881   :  { %5751 = vmatpush3.bf16.msra.mxu0 %v6264_v17  ;;  %5773 = vmatpush3.bf16.msra.mxu1 %v6265_v18  ;;  %v1207_v28 = vpop.f32.mrb[22].mxu0  ;;  %v1248_v29 = vpop.f32.mrb[22].mxu1  ;;  %v6291_v17 = vld [vmem:[%s7989_s3 + $0x2d8] sm:$0xff]  }
 0x882   :  { %v1208_v34 = vpop.f32.mrb[23].mxu0  ;;  %v1249_v35 = vpop.f32.mrb[23].mxu1  ;;  %5752 = vmatprep.subr.bf16.mxu0 %v6266_v21  ;;  %5774 = vmatprep.subr.bf16.mxu1 %v6267_v22  ;;  %v6292_v18 = vld [vmem:[%s7989_s3 + $0x218] sm:$0xff]   ;;  %v6295_v21 = vld [vmem:[%s7989_s3 + $0x2e0] sm:$0xff]   ;;  %v7086_v22 = vld [vmem:[%s7988_s2 + $0x130] sm:$0x11] }
 0x883   :  { %v7095_v28 = vld [vmem:[%s7988_s2 + $0x138] sm:$0x11]  ;;  %v6297_v29 = vld [vmem:[%s7989_s3 + $0x2a0] sm:$0xff]   ;;  %v692_v32 = vunpack.c.h.bf16 %v7086_v22  ;;  %v6300_v34 = vld [vmem:[%s7989_s3 + $0x228] sm:$0xff]   ;;  %v731_v35 = vrot.slane %v687_v8, %v6883_v62 }
 0x884   :  { %v694_v33 = vunpack.c.h.bf16 %v7095_v28  ;;  %v693_v8 = vunpack.c.l.bf16 %v7095_v28  ;;  %v6334_v28 = vld [vmem:[%s7989_s3 + $0x370] sm:$0xff]  }
 0x885   :  { %5753 = vmatpush3.bf16.msra.mxu0 %v6268_v30  ;;  %5775 = vmatpush3.bf16.msra.mxu1 %v6269_v31  ;;  %v6298_v30 = vld [vmem:[%s7989_s3 + $0x268] sm:$0xff]   ;;  %v689_v31 = vunpack.c.l.bf16 %v6967_v16  ;;  %v751_v41 = vrot.slane %v692_v32, %v6883_v62  ;;  %v1122_v44 = vadd.f32 %v6943_v63, %v731_v35  ;;  %v6335_v32 = vld [vmem:[%s7989_s3 + $0x3f0] sm:$0xff]  }
 0x886   :  { %5754 = vmatprep.subr.bf16.mxu0 %v6270_v36  ;;  %5776 = vmatprep.subr.bf16.mxu1 %v6271_v37  ;;  %v6301_v16 = vld [vmem:[%s7989_s3 + $0x2a8] sm:$0xff]   ;;  %v6302_v36 = vld [vmem:[%s7989_s3 + $0x270] sm:$0xff]  }
 0x887   :  { %v739_v37 = vrot.slane %v689_v31, %v6883_v62  ;;  %v1206_v50 = vadd.f32 %v6989_v26, %v751_v41  ;;  %v6311_v26 = vld [vmem:[%s7989_s3 + $0x3c0] sm:$0xff]   ;;  %v6333_v31 = vld [vmem:[%s7989_s3 + $0x3a8] sm:$0xff]   ;;  %v6337_v35 = vld [vmem:[%s7989_s3 + $0x3b0] sm:$0xff]  }
 0x888   :  { %v6341_v41 = vld [vmem:[%s7989_s3 + $0x3b8] sm:$0xff]  }
 0x889   :  { %5755 = vmatpush3.bf16.msra.mxu0 %v6272_v42  ;;  %5777 = vmatpush3.bf16.msra.mxu1 %v6273_v43  ;;  %v759_v42 = vrot.slane %v694_v33, %v6883_v62  ;;  %v6304_v43 = vld [vmem:[%s7989_s3 + $0x230] sm:$0xff]  }
 0x88a   :  { %5756 = vmatprep.subr.bf16.mxu0 %v6274_v47  ;;  %5778 = vmatprep.subr.bf16.mxu1 %v6275_v48  ;;  %v6306_v47 = vld [vmem:[%s7989_s3 + $0x278] sm:$0xff]   ;;  %v1163_v48 = vadd.f32 %v6945_v0, %v739_v37  ;;  %v6336_v33 = vld [vmem:[%s7989_s3 + $0x330] sm:$0xff]  }
 0x88b   :  { %v1247_v63 = vadd.f32 %v6991_v9, %v759_v42  ;;  %v6309_v0 = vld [vmem:[%s7989_s3 + $0x2b8] sm:$0xff]   ;;  %v1264_v9 = vmax.f32 %v1206_v50, 0.0 }
 0x88c   :  { %v1261_v52 = vmax.f32 %v1163_v48, 0.0  ;;  %v6339_v37 = vld [vmem:[%s7989_s3 + $0x3f8] sm:$0xff]  }
 0x88d   :  { %5757 = vmatpush3.bf16.msra.mxu0 %v6276_v39  ;;  %5779 = vmatpush3.bf16.msra.mxu1 %v6277_v40  ;;  %v6308_v39 = vld [vmem:[%s7989_s3 + $0x238] sm:$0xff]   ;;  %v1259_v40 = vmax.f32 %v1122_v44, 0.0 }
 0x88e   :  { %5786 = vmatprep.subr.bf16.mxu0 %v6278_v53  ;;  %5808 = vmatprep.subr.bf16.mxu1 %v6279_v54  ;;  %v1266_v53 = vmax.f32 %v1247_v63, 0.0  ;;  %v6312_v54 = vld [vmem:[%s7989_s3 + $0x300] sm:$0xff]  }
 0x88f   :  { %v1531_v55 = vpack.c.bf16 %v1259_v40, %v1259_v40 }
 0x890   :  { %2425 = vmatmul.mubr.bf16.vlgmr.msra.gmra.mrb[28].mxu0 %v1527_v58  ;;  %2465 = vmatmul.mubr.bf16.vlgmr.msra.gmra.mrb[28].mxu1 %v1529_v59  ;;  %v6314_v58 = vld [vmem:[%s7989_s3 + $0x348] sm:$0xff]   ;;  %v1536_v59 = vpack.c.bf16 %v1264_v9, %v1264_v9 }
 0x891   :  { %5787 = vmatpush3.bf16.msra.mxu0 %v6280_v57  ;;  %2504 = vmatprep.mubr.bf16.mxu0 %v1532_v61  ;;  %v1533_v57 = vpack.c.bf16 %v1261_v52, %v1261_v52  ;;  %v1538_v61 = vpack.c.bf16 %v1266_v53, %v1266_v53 }
 0x892   :  { %5809 = vmatpush3.bf16.msra.mxu1 %v6281_v60  ;;  %2544 = vmatprep.mubr.bf16.mxu1 %v1534_v4  ;;  %v6315_v60 = vld [vmem:[%s7989_s3 + $0x3c8] sm:$0xff]   ;;  %v6318_v4 = vld [vmem:[%s7989_s3 + $0x350] sm:$0xff]  }
 0x893   :  { %5788 = vmatprep.subr.bf16.mxu0 %v6282_v2  ;;  %5810 = vmatprep.subr.bf16.mxu1 %v6283_v3  ;;  %v6316_v2 = vld [vmem:[%s7989_s3 + $0x308] sm:$0xff]  }
 0x894   :  { %v6317_v3 = vld [vmem:[%s7989_s3 + $0x388] sm:$0xff]  }
 0x895   :  { %5789 = vmatpush3.bf16.msra.mxu0 %v6284_v6  ;;  %v6319_v6 = vld [vmem:[%s7989_s3 + $0x3d0] sm:$0xff]  }
 0x896   :  { %5811 = vmatpush3.bf16.msra.mxu1 %v6285_v7  ;;  %5790 = vmatprep.subr.bf16.mxu0 %v6286_v10  ;;  %v6320_v7 = vld [vmem:[%s7989_s3 + $0x310] sm:$0xff]  }
 0x897   :  { %5812 = vmatprep.subr.bf16.mxu1 %v6287_v11  ;;  %v6321_v10 = vld [vmem:[%s7989_s3 + $0x390] sm:$0xff]   ;;  %v6322_v11 = vld [vmem:[%s7989_s3 + $0x358] sm:$0xff]  }
 0x899   :  { %5791 = vmatpush3.bf16.msra.mxu0 %v6288_v12  ;;  %v6323_v12 = vld [vmem:[%s7989_s3 + $0x3d8] sm:$0xff]  }
 0x89a   :  { %5813 = vmatpush3.bf16.msra.mxu1 %v6289_v13  ;;  %5792 = vmatprep.subr.bf16.mxu0 %v6290_v14  ;;  %v6324_v13 = vld [vmem:[%s7989_s3 + $0x318] sm:$0xff]  }
 0x89b   :  { %5814 = vmatprep.subr.bf16.mxu1 %v6291_v17  ;;  %v6325_v14 = vld [vmem:[%s7989_s3 + $0x398] sm:$0xff]   ;;  %v6326_v17 = vld [vmem:[%s7989_s3 + $0x360] sm:$0xff]  }
 0x89d   :  { %5793 = vmatpush3.bf16.msra.mxu0 %v6292_v18  ;;  %v6327_v18 = vld [vmem:[%s7989_s3 + $0x3e0] sm:$0xff]  }
 0x89e   :  { %5815 = vmatpush3.bf16.msra.mxu1 %v6293_v19  ;;  %5794 = vmatprep.subr.bf16.mxu0 %v6294_v20  ;;  %v6328_v19 = vld [vmem:[%s7989_s3 + $0x320] sm:$0xff]   ;;  %v691_v20 = vunpack.c.l.bf16 %v7086_v22  ;;  %v6332_v22 = vld [vmem:[%s7989_s3 + $0x328] sm:$0xff]  }
 0x89f   :  { %5816 = vmatprep.subr.bf16.mxu1 %v6295_v21  ;;  %v6329_v21 = vld [vmem:[%s7989_s3 + $0x3a0] sm:$0xff]  }
 0x8a1   :  { %5795 = vmatpush3.bf16.msra.mxu0 %v6296_v23  ;;  %v6330_v23 = vld [vmem:[%s7989_s3 + $0x368] sm:$0xff]  }
 0x8a2   :  { %5817 = vmatpush3.bf16.msra.mxu1 %v6297_v29  ;;  %5796 = vmatprep.subr.bf16.mxu0 %v6298_v30  ;;  %v6331_v29 = vld [vmem:[%s7989_s3 + $0x3e8] sm:$0xff]   ;;  %v747_v30 = vrot.slane %v691_v20, %v6883_v62 }
 0x8a3   :  { %5818 = vmatprep.subr.bf16.mxu1 %v6299_v15  ;;  %v755_v15 = vrot.slane %v693_v8, %v6883_v62 }
 0x8a5   :  { %5797 = vmatpush3.bf16.msra.mxu0 %v6300_v34  ;;  %v1204_v34 = vadd.f32 %v6984_v24, %v747_v30  ;;  %v6340_v24 = vld [vmem:[%s7989_s3 + $0x338] sm:$0xff]  }
 0x8a6   :  { %5819 = vmatpush3.bf16.msra.mxu1 %v6301_v16  ;;  %5798 = vmatprep.subr.bf16.mxu0 %v6302_v36  ;;  %v6338_v16 = vld [vmem:[%s7989_s3 + $0x378] sm:$0xff]   ;;  %v1245_v36 = vadd.f32 %v6986_v25, %v755_v15 }
 0x8a7   :  { %5820 = vmatprep.subr.bf16.mxu1 %v6303_v38  ;;  %v1263_v38 = vmax.f32 %v1204_v34, 0.0 }
 0x8a8   :  { %v1265_v42 = vmax.f32 %v1245_v36, 0.0 }
 0x8a9   :  { %5799 = vmatpush3.bf16.msra.mxu0 %v6304_v43  ;;  %v1535_v25 = vpack.c.bf16 %v1263_v38, %v1263_v38 }
 0x8aa   :  { %5821 = vmatpush3.bf16.msra.mxu1 %v6305_v46  ;;  %5800 = vmatprep.subr.bf16.mxu0 %v6306_v47  ;;  %v1537_v43 = vpack.c.bf16 %v1265_v42, %v1265_v42  ;;  %v5360_v47 = vld [vmem:[%s7987_s1 + $0xa8] ss:$0 sm:$0xff]  ;;  %v2658_v42 = vld [vmem:[%s7987_s1 + $0xb0] sm:$0xff] }
 0x8ab   :  { %5822 = vmatprep.subr.bf16.mxu1 %v6307_v49 }
 0x8ad   :  { %5801 = vmatpush3.bf16.msra.mxu0 %v6308_v39 }
 0x8ae   :  { %5823 = vmatpush3.bf16.msra.mxu1 %v6309_v0  ;;  %5830 = vmatprep.subr.bf16.mxu0 %v6310_v51 }
 0x8af   :  { %5852 = vmatprep.subr.bf16.mxu1 %v6311_v26 }
 0x8b0   :  { %2505 = vmatmul.mubr.bf16.vlgmr.msra.gmra.mrb[32].mxu0 %v1531_v55 }
 0x8b1   :  { %2545 = vmatmul.mubr.bf16.vlgmr.msra.gmra.mrb[32].mxu1 %v1533_v57  ;;  %5831 = vmatpush3.bf16.msra.mxu0 %v6312_v54 }
 0x8b2   :  { %2584 = vmatprep.mubr.bf16.mxu0 %v1536_v59  ;;  %5853 = vmatpush3.bf16.msra.mxu1 %v6313_v56 }
 0x8b3   :  { %2624 = vmatprep.mubr.bf16.mxu1 %v1538_v61  ;;  %5832 = vmatprep.subr.bf16.mxu0 %v6314_v58 }
 0x8b4   :  { %5854 = vmatprep.subr.bf16.mxu1 %v6315_v60 }
 0x8b5   :  { %5833 = vmatpush3.bf16.msra.mxu0 %v6316_v2 }
 0x8b6   :  { %5855 = vmatpush3.bf16.msra.mxu1 %v6317_v3  ;;  %5834 = vmatprep.subr.bf16.mxu0 %v6318_v4 }
 0x8b7   :  { %5856 = vmatprep.subr.bf16.mxu1 %v6319_v6 }
 0x8b9   :  { %5835 = vmatpush3.bf16.msra.mxu0 %v6320_v7 }
 0x8ba   :  { %5857 = vmatpush3.bf16.msra.mxu1 %v6321_v10  ;;  %5836 = vmatprep.subr.bf16.mxu0 %v6322_v11 }
 0x8bb   :  { %5858 = vmatprep.subr.bf16.mxu1 %v6323_v12 }
 0x8bd   :  { %5837 = vmatpush3.bf16.msra.mxu0 %v6324_v13 }
 0x8be   :  { %5859 = vmatpush3.bf16.msra.mxu1 %v6325_v14  ;;  %5838 = vmatprep.subr.bf16.mxu0 %v6326_v17 }
 0x8bf   :  { %5860 = vmatprep.subr.bf16.mxu1 %v6327_v18 }
 0x8c1   :  { %5839 = vmatpush3.bf16.msra.mxu0 %v6328_v19 }
 0x8c2   :  { %5861 = vmatpush3.bf16.msra.mxu1 %v6329_v21  ;;  %5840 = vmatprep.subr.bf16.mxu0 %v6330_v23 }
 0x8c3   :  { %5862 = vmatprep.subr.bf16.mxu1 %v6331_v29 }
 0x8c5   :  { %5841 = vmatpush3.bf16.msra.mxu0 %v6332_v22 }
 0x8c6   :  { %5863 = vmatpush3.bf16.msra.mxu1 %v6333_v31  ;;  %5842 = vmatprep.subr.bf16.mxu0 %v6334_v28 }
 0x8c7   :  { %5864 = vmatprep.subr.bf16.mxu1 %v6335_v32 }
 0x8c9   :  { %5843 = vmatpush3.bf16.msra.mxu0 %v6336_v33 }
 0x8ca   :  { %5865 = vmatpush3.bf16.msra.mxu1 %v6337_v35  ;;  %5844 = vmatprep.subr.bf16.mxu0 %v6338_v16 }
 0x8cb   :  { %5866 = vmatprep.subr.bf16.mxu1 %v6339_v37 }
 0x8cd   :  { %5845 = vmatpush3.bf16.msra.mxu0 %v6340_v24 }
 0x8ce   :  { %5867 = vmatpush3.bf16.msra.mxu1 %v6341_v41  ;;  %6185 = vmatprep.subr.bf16.mxu0 %v6520_v5 }
 0x8cf   :  { %6136 = vmatprep.subr.mxu1 %v6518_v1 }
 0x8d0   :  { %2585 = vmatmul.mubr.bf16.vlgmr.msra.gmra.mrb[36].mxu0 %v1535_v25  ;;  %v2659_v25 = vld [vmem:[%s7987_s1 + $0xb8] sm:$0xff] }
 0x8d1   :  { %2625 = vmatmul.mubr.bf16.vlgmr.msra.gmra.mrb[36].mxu1 %v1537_v43  ;;  %6128 = vmatprep.mubr.msk.f32.mxu0 %vm6519_vm2, %v6518_v1  ;;  %v6186_v43 = vpack.c.bf16 %v2659_v25, %v2658_v42  ;;  %v5501_v42 = vld [vmem:[%s7987_s1 + $0xf8] ss:$0 sm:$0xff] }
 0x8d2   :  { %6138 = vmatprep.mubr.msk.f32.mxu1 %vm6519_vm2, %v6518_v1 }
 0x8d3   :  { %6187 = vmatpush3.bf16.msra.mxu0 %v6186_v43 }
 0x8d4   :  { %6188 = vmatprep.subr.bf16.mxu0 %v6520_v5 }
 0x943   :  { %v5714_v44 = vpop.f32.mrb[24].mxu0  ;;  %v5736_v46 = vpop.f32.mrb[24].mxu1 }
 0x944   :  { %v5715_v48 = vpop.f32.mrb[25].mxu0  ;;  %v5737_v49 = vpop.f32.mrb[25].mxu1 }
 0x945   :  { %v5716_v50 = vadd.f32 %v5715_v48, %v5714_v44  ;;  %v5738_v63 = vadd.f32 %v5737_v49, %v5736_v46  ;;  %v5717_v39 = vpop.f32.mrb[26].mxu0  ;;  %v5739_v40 = vpop.f32.mrb[26].mxu1  ;;  %v2661_v44 = vld [vmem:[%s7987_s1 + $0xc8] sm:$0xff] }
 0x946   :  { %v5718_v0 = vpop.f32.mrb[27].mxu0  ;;  %v5740_v51 = vpop.f32.mrb[27].mxu1  ;;  %v5490_v40 = vld [vmem:[%s7987_s1 + $0xa0] ss:$0 sm:$0xff] }
 0x947   :  { %v2347_v52 = vadd.f32 %v5716_v50, %v5360_v47 }
 0x949   :  { %v2387_v26 = vadd.f32 %v5738_v63, %v2347_v52  ;;  %v5489_v63 = vld [vmem:[%s7987_s1 + $0x98] ss:$0 sm:$0xff]  ;;  %v5491_v52 = vld [vmem:[%s7987_s1 + $0xd0] ss:$0 sm:$0xff] }
 0x963   :  { %v5758_v9 = vpop.f32.mrb[28].mxu0  ;;  %v5780_v53 = vpop.f32.mrb[28].mxu1 }
 0x964   :  { %v5759_v54 = vpop.f32.mrb[29].mxu0  ;;  %v5781_v55 = vpop.f32.mrb[29].mxu1 }
 0x965   :  { %v5760_v56 = vadd.f32 %v5759_v54, %v5758_v9  ;;  %v5782_v57 = vadd.f32 %v5781_v55, %v5780_v53  ;;  %v5761_v58 = vpop.f32.mrb[30].mxu0  ;;  %v5783_v59 = vpop.f32.mrb[30].mxu1 }
 0x966   :  { %v5762_v60 = vpop.f32.mrb[31].mxu0  ;;  %v5784_v61 = vpop.f32.mrb[31].mxu1 }
 0x967   :  { %v2427_v2 = vadd.f32 %v5760_v56, %v2387_v26 }
 0x969   :  { %v2467_v3 = vadd.f32 %v5782_v57, %v2427_v2 }
 0x983   :  { %v5802_v4 = vpop.f32.mrb[32].mxu0 }
 0x984   :  { %v5824_v6 = vpop.f32.mrb[32].mxu1  ;;  %v5803_v7 = vpop.f32.mrb[33].mxu0 }
 0x985   :  { %v5804_v10 = vadd.f32 %v5803_v7, %v5802_v4  ;;  %v5825_v11 = vpop.f32.mrb[33].mxu1  ;;  %v5805_v12 = vpop.f32.mrb[34].mxu0 }
 0x986   :  { %v5826_v13 = vadd.f32 %v5825_v11, %v5824_v6  ;;  %v5827_v14 = vpop.f32.mrb[34].mxu1  ;;  %v5806_v17 = vpop.f32.mrb[35].mxu0 }
 0x987   :  { %v2507_v18 = vadd.f32 %v5804_v10, %v2467_v3  ;;  %v5828_v19 = vpop.f32.mrb[35].mxu1 }
 0x989   :  { %v2547_v20 = vadd.f32 %v5826_v13, %v2507_v18 }
 0x9a3   :  { %v5846_v21 = vpop.f32.mrb[36].mxu0 }
 0x9a4   :  { %v5868_v23 = vpop.f32.mrb[36].mxu1  ;;  %v5847_v8 = vpop.f32.mrb[37].mxu0 }
 0x9a5   :  { %v5848_v29 = vadd.f32 %v5847_v8, %v5846_v21  ;;  %v5869_v22 = vpop.f32.mrb[37].mxu1  ;;  %v5849_v30 = vpop.f32.mrb[38].mxu0 }
 0x9a6   :  { %v5870_v31 = vadd.f32 %v5869_v22, %v5868_v23  ;;  %v5871_v28 = vpop.f32.mrb[38].mxu1  ;;  %v5850_v15 = vpop.f32.mrb[39].mxu0 }
 0x9a7   :  { %v2587_v32 = vadd.f32 %v5848_v29, %v2547_v20  ;;  %v5872_v33 = vpop.f32.mrb[39].mxu1  ;;  %v3078_v28 = vld [vmem:[%s7987_s1 + $0xd8] sm:$0xff]  ;;  %v3079_v15 = vld [vmem:[%s7987_s1 + $0xe0] sm:$0xff] }
 0x9a8   :  { %v6192_v33 = vpack.c.bf16 %v3079_v15, %v3078_v28 }
 0x9a9   :  { %v2627_v34 = vadd.f32 %v5870_v31, %v2587_v32  ;;  %v3080_v32 = vld [vmem:[%s7987_s1 + $0xe8] sm:$0xff] }
 0x9ab   :  { %v2632_v35 = vadd.f32 %v2627_v34, %v6699_v45  ;;  %v2660_v45 = vld [vmem:[%s7987_s1 + $0xc0] sm:$0xff]  ;;  %v3081_v34 = vld [vmem:[%s7987_s1 + $0xf0] sm:$0xff] }
 0x9ac   :  { %v6189_v46 = vpack.c.bf16 %v2661_v44, %v2660_v45 }
 0x9ad   :  { %v2635_v16 = vsel %vm614_vm8, %v2632_v35, 0.0 }
 0x9ae   :  { %2636 = vadd.xlane.f32.xlu0 %v2635_v16  ;;  %6190 = vmatpush3.bf16.msra.mxu0 %v6189_v46 }
 0x9af   :  { %6131 = vmatprep.subr.mxu0 %v6518_v1 }
 0xa3b   :  { %v2637_v36 = vpop.xlane.xlu0 %2636 }
 0xa3c   :  { %v2638_v37 = vmul.f32 0.03125, %v2637_v36 }
 0xa3e   :  { %v2639_v24 = vsub.f32 %v2632_v35, %v2638_v37  ;;  %v6195_v35 = vpack.c.bf16 %v3081_v34, %v3080_v32  ;;  %v3198_v34 = vld [vmem:[%s7988_s2 + $0x1e0] sm:$0xff] }
 0xa40   :  { %v2640_v38 = vmul.f32 %v2639_v24, %v2639_v24 }
 0xa42   :  { %v2641_v41 = vsel %vm614_vm8, %v2640_v38, 0.0 }
 0xa43   :  { %2642 = vadd.xlane.f32.xlu0 %v2641_v41 }
 0xad0   :  { %v2643_v47 = vpop.xlane.xlu0 %2642 }
 0xad1   :  { %v2644_v48 = vmul.f32 0.03125, %v2643_v47 }
 0xad3   :  { %v2645_v49 = vadd.f32 1e-05, %v2644_v48 }
 0xad5   :  { %6480 = vrsqrt.f32 %v2645_v49 }
 0xadf   :  { %v6481_v50 = vpop.eup %6480 }
 0xae0   :  { %v2647_v39 = vmul.f32 %v6481_v50, %v2639_v24 }
 0xae2   :  { %v2652_v0 = vmul.f32 %v5489_v63, %v2647_v39  ;;  %v3186_v39 = vld [vmem:[%s7988_s2 + $0x180] sm:$0xff] }
 0xae4   :  { %v7281_v51 = vadd.f32 %v5490_v40, %v2652_v0  ;;  %v3194_v40 = vld [vmem:[%s7988_s2 + $0x1c0] sm:$0xff]  ;;  %v3187_v0 = vld [vmem:[%s7988_s2 + $0x188] sm:$0xff] }
 0xae6   :  { %6129 = vmatmul.mubr.msk.f32.vlgmr.msra.gmra.mrb[40].mxu0 %vm113_vm3, %v7281_v51 }
 0xae7   :  { %6133 = vmatprep.mubr.msk.f32.mxu0 %vm6519_vm2, %v6518_v1 }
 0xbb9   :  { %v2736_v26 = vpop.f32.mrb[40].mxu0 }
 0xbba   :  { %v2737_v9 = vadd.f32 %v5491_v52, %v2736_v26  ;;  %v6130_v53 = vpop.f32.mrb[41].mxu0  ;;  %v3195_v52 = vld [vmem:[%s7988_s2 + $0x1c8] sm:$0xff]  ;;  %v5505_v26 = vcombine.low %v3186_v39, %v3194_v40 }
 0xbbb   :  { %v5508_v53 = vcombine.high %v3187_v0, %v3195_v52 }
 0xbbc   :  { %2908 = vrot.lane.b32.xlu0 %v2737_v9, %s6523_s6  ;;  %2741 = vrot.lane.b32.xlu1 %v2737_v9, %s6522_s5 }
 0xbc0   :  { %2906 = vrot.lane.b32.xlu1 %v2737_v9, %s6521_s30 }
 0xc2e   :  { %v2742_v54 = vpop.permute.xlu1 %2741  ;;  %v2909_v55 = vpop.permute.xlu0 %2908 }
 0xc2f   :  { %6132 = vmatpush3.xpose.msk.msra.mxu0 %vm190_vm4, %v2742_v54  ;;  %v3202_v54 = vld [vmem:[%s7988_s2 + $0x200] sm:$0xff] }
 0xc30   :  { %6141 = vmatprep.subr.mxu0 %v6518_v1 }
 0xc32   :  { %6134 = vmatmul.mubr.msk.f32.vlgmr.msra.gmra.mrb[42].mxu0 %vm190_vm4, %v2737_v9  ;;  %v2907_v56 = vpop.permute.xlu1 %2906 }
 0xc33   :  { %6142 = vmatpush3.xpose.msk.msra.mxu0 %vm190_vm4, %v2909_v55  ;;  %6143 = vmatprep.mubr.msk.f32.mxu0 %vm6519_vm2, %v6518_v1  ;;  %v3210_v55 = vld [vmem:[%s7988_s2 + $0x240] sm:$0xff] }
 0xc34   :  { %6191 = vmatprep.subr.bf16.mxu0 %v6520_v5 }
 0xc36   :  { %6144 = vmatmul.mubr.msk.f32.vlgmr.msra.gmra.mrb[44].mxu0 %vm190_vm4, %v2907_v56  ;;  %v3203_v56 = vld [vmem:[%s7988_s2 + $0x208] sm:$0xff] }
 0xc37   :  { %6159 = vmatprep.mubr.msk.f32.mxu0 %vm6519_vm2, %v6518_v1  ;;  %6193 = vmatpush3.bf16.msra.mxu0 %v6192_v33  ;;  %v3190_v33 = vld [vmem:[%s7988_s2 + $0x1a0] sm:$0xff] }
 0xc38   :  { %6194 = vmatprep.subr.bf16.mxu0 %v6520_v5 }
 0xc3b   :  { %6196 = vmatpush3.bf16.msra.mxu0 %v6195_v35  ;;  %v3191_v35 = vld [vmem:[%s7988_s2 + $0x1a8] sm:$0xff] }
 0xc3c   :  { %3511 = vmatprep.subr.bf16.mxu0 %v5508_v53  ;;  %v3217_v53 = vld [vmem:[%s7988_s2 + $0x278] sm:$0xff] }
 0xd05   :  { %v2813_v57 = vpop.f32.mrb[42].mxu0 }
 0xd06   :  { %v2817_v58 = vmul.f32 0.25, %v2813_v57  ;;  %v6135_v59 = vpop.f32.mrb[43].mxu0  ;;  %v5522_v57 = vcombine.high %v3202_v54, %v3210_v55 }
 0xd07   :  { %v5521_v59 = vcombine.low %v3202_v54, %v3210_v55 }
 0xd08   :  { %v2818_v60 = vsel %vm266_vm5, %v2817_v58, -inf }
 0xd09   :  { %2819 = vmax.xlane.f32.xlu1 %v2818_v60  ;;  %v2980_v61 = vpop.f32.mrb[44].mxu0 }
 0xd0a   :  { %v2984_v2 = vmul.f32 0.25, %v2980_v61  ;;  %v6145_v3 = vpop.f32.mrb[45].mxu0 }
 0xd0b   :  { %v3196_v3 = vld [vmem:[%s7988_s2 + $0x1d0] sm:$0xff] }
 0xd0c   :  { %v2985_v4 = vsel %vm266_vm5, %v2984_v2, -inf }
 0xd0d   :  { %2986 = vmax.xlane.f32.xlu0 %v2985_v4  ;;  %v3189_v4 = vld [vmem:[%s7988_s2 + $0x198] sm:$0xff] }
 0xd96   :  { %v2820_v6 = vpop.xlane.xlu1 %2819 }
 0xd97   :  { %v2821_v7 = vsub.f32 %v2817_v58, %v2820_v6  ;;  %v3211_v58 = vld [vmem:[%s7988_s2 + $0x248] sm:$0xff] }
 0xd98   :  { %v5523_v60 = vcombine.low %v3203_v56, %v3211_v58  ;;  %v5524_v61 = vcombine.high %v3203_v56, %v3211_v58 }
 0xd99   :  { %v2822_v10 = vmul.f32 1.442695, %v2821_v7 }
 0xd9a   :  { %v2987_v11 = vpop.xlane.xlu0 %2986 }
 0xd9b   :  { %6482 = vpow2.f32 %v2822_v10  ;;  %v2988_v12 = vsub.f32 %v2984_v2, %v2987_v11  ;;  %v3188_v2 = vld [vmem:[%s7988_s2 + $0x190] sm:$0xff]  ;;  %v3197_v10 = vld [vmem:[%s7988_s2 + $0x1d8] sm:$0xff] }
 0xd9c   :  { %v5509_v6 = vcombine.low %v3188_v2, %v3196_v3  ;;  %v5510_v7 = vcombine.high %v3188_v2, %v3196_v3  ;;  %v5511_v11 = vcombine.low %v3189_v4, %v3197_v10  ;;  %v6344_v2 = vld [vmem:[%s7989_s3 + $0x400] sm:$0xff]  }
 0xd9d   :  { %v2989_v13 = vmul.f32 1.442695, %v2988_v12  ;;  %v5512_v12 = vcombine.high %v3189_v4, %v3197_v10  ;;  %v6345_v3 = vld [vmem:[%s7989_s3 + $0x480] sm:$0xff]   ;;  %v6346_v4 = vld [vmem:[%s7989_s3 + $0x448] sm:$0xff]   ;;  %v6350_v10 = vld [vmem:[%s7989_s3 + $0x450] sm:$0xff]  }
 0xd9f   :  { %6484 = vpow2.f32 %v2989_v13 }
 0xda5   :  { %v6483_v14 = vpop.eup %6482 }
 0xda6   :  { %v2824_v17 = vsel %vm266_vm5, %v6483_v14, 0.0 }
 0xda7   :  { %2825 = vadd.xlane.f32.xlu0 %v2824_v17 }
 0xda9   :  { %v6485_v18 = vpop.eup %6484 }
 0xdaa   :  { %v2991_v19 = vsel %vm266_vm5, %v6485_v18, 0.0 }
 0xdab   :  { %2992 = vadd.xlane.f32.xlu1 %v2991_v19  ;;  %v5503_v19 = vld [vmem:[%s7987_s1 + $0x100] ss:$0 sm:$0xff] }
 0xdbc   :  { %2996 = vrot.lane.b32.xlu1 %v2737_v9, %s6524_s7 }
 0xdbd   :  { %2829 = vrot.lane.b32.xlu0 %v2737_v9, %s6525_s8  ;;  %v5507_v9 = vcombine.low %v3187_v0, %v3195_v52  ;;  %v3208_v52 = vld [vmem:[%s7988_s2 + $0x230] sm:$0xff] }
 0xe34   :  { %v2826_v20 = vpop.xlane.xlu0 %2825 }
 0xe35   :  { %6486 = vrcp.f32 %v2826_v20 }
 0xe38   :  { %v2993_v21 = vpop.xlane.xlu1 %2992  ;;  %v2830_v23 = vpop.permute.xlu0 %2829 }
 0xe39   :  { %6488 = vrcp.f32 %v2993_v21  ;;  %6137 = vmatpush3.msk.msra.mxu1 %vm284_vm6, %v2830_v23  ;;  %v5504_v21 = vld [vmem:[%s7987_s1 + $0x108] ss:$0 sm:$0xff] }
 0xe3a   :  { %6146 = vmatprep.subr.mxu1 %v6518_v1 }
 0xe3c   :  { %v2997_v22 = vpop.permute.xlu1 %2996 }
 0xe3f   :  { %v6487_v8 = vpop.eup %6486 }
 0xe40   :  { %v2828_v29 = vmul.f32 %v6487_v8, %v6483_v14  ;;  %v3204_v8 = vld [vmem:[%s7988_s2 + $0x210] sm:$0xff] }
 0xe42   :  { %6139 = vmatmul.mubr.msk.f32.vlgmr.msra.gmra.mrb[6].mxu1 %vm280_vm7, %v2828_v29  ;;  %v3212_v29 = vld [vmem:[%s7988_s2 + $0x250] sm:$0xff] }
 0xe43   :  { %v6489_v30 = vpop.eup %6488  ;;  %6147 = vmatpush3.msk.msra.mxu1 %vm284_vm6, %v2997_v22  ;;  %6148 = vmatprep.mubr.msk.f32.mxu1 %vm6519_vm2, %v6518_v1  ;;  %v3205_v22 = vld [vmem:[%s7988_s2 + $0x218] sm:$0xff]  ;;  %v5526_v15 = vcombine.high %v3204_v8, %v3212_v29 }
 0xe44   :  { %v2995_v31 = vmul.f32 %v6489_v30, %v6485_v18  ;;  %v3213_v30 = vld [vmem:[%s7988_s2 + $0x258] sm:$0xff] }
 0xe45   :  { %v5528_v32 = vcombine.high %v3205_v22, %v3213_v30 }
 0xe46   :  { %6149 = vmatmul.mubr.msk.f32.vlgmr.msra.gmra.mrb[40].mxu1 %vm280_vm7, %v2995_v31 }
 0xe47   :  { %3502 = vmatprep.mubr.bf16.mxu1 %v6527_v27 }
 0xf15   :  { %v2902_v16 = vpop.f32.mrb[6].mxu1 }
 0xf16   :  { %v6140_v36 = vpop.f32.mrb[7].mxu1 }
 0xf17   :  { %v5525_v36 = vcombine.low %v3204_v8, %v3212_v29  ;;  %v6361_v8 = vld [vmem:[%s7989_s3 + $0x4a0] sm:$0xff]   ;;  %v6362_v29 = vld [vmem:[%s7989_s3 + $0x468] sm:$0xff]  }
 0xf19   :  { %v3069_v37 = vpop.f32.mrb[40].mxu1 }
 0xf1a   :  { %3074 = vrot.lane.b32.xlu1 %v3069_v37, %s6526_s17  ;;  %v6150_v24 = vpop.f32.mrb[41].mxu1  ;;  %v5527_v37 = vcombine.low %v3205_v22, %v3213_v30  ;;  %v6363_v22 = vld [vmem:[%s7989_s3 + $0x4e8] sm:$0xff]   ;;  %s6528_s17 = smov [#allocation2]  }
 0xf1b   :  { %v5514_v24 = vcombine.high %v3190_v33, %v3198_v34  ;;  %v6364_v30 = vld [vmem:[%s7989_s3 + $0x428] sm:$0xff]   ;;  %s5295_s23 = sshll.u32 %s6528_s17, 4  ;;  %s5296_s23 = int_to_ptr.vmem [resolvable:$true] %s5295_s23 }
 0xf1c   :  { %s6494_s24 = scalar_lea.vmem %s5296_s23, 32  ;;  %p6499_p1 = scmp.lt.s32.totalorder %s5296_s23, %s5296_s23 }
 0xf1d   :  { %p6495_p0 = scmp.ne.s32.totalorder %s5296_s23, %s6494_s24  ;;  %p6500_p2 = scmp.lt.s32.totalorder %s6494_s24, %s6494_s24 }
 0xf1f   :  { %p6501_p3 = por %p6500_p2, %p6499_p1 }
 0xf21   :  { %p6502_p4 = pnand %p6501_p3, %p6495_p0 }
 0xf8c   :  { %v3075_v38 = vpop.permute.xlu1 %3074 }
 0xf8d   :  { %v3077_v41 = vsel %vm190_vm4, %v2902_v16, %v3075_v38  ;;  %v3199_v16 = vld [vmem:[%s7988_s2 + $0x1e8] sm:$0xff] }
 0xf8e   :  { %6160 = vmatmul.mubr.msk.f32.vlgmr.msra.gmra.mrb[46].mxu0 %vm113_vm3, %v3077_v41  ;;  %v5516_v38 = vcombine.high %v3191_v35, %v3199_v16  ;;  %v3206_v41 = vld [vmem:[%s7988_s2 + $0x220] sm:$0xff] }
 0xf8f   :  { %3543 = vmatprep.mubr.bf16.mxu0 %v6527_v27  ;;  %3512 = vmatpush1.bf16.msra.mxu0 %v5507_v9  ;;  %v3209_v9 = vld [vmem:[%s7988_s2 + $0x238] sm:$0xff] }
 0xf90   :  { %3513 = vmatprep.subr.bf16.mxu0 %v5524_v61  ;;  %v6343_v61 = vld [vmem:[%s7989_s3 + $0x4c0] sm:$0xff]  }
 0xf93   :  { %3514 = vmatpush1.bf16.msra.mxu0 %v5523_v60  ;;  %v6342_v60 = vld [vmem:[%s7989_s3 + $0x440] sm:$0xff]  }
 0xf94   :  { %3593 = vmatprep.subr.bf16.mxu0 %v5512_v12  ;;  %v6352_v12 = vld [vmem:[%s7989_s3 + $0x410] sm:$0xff]  }
0x1061   :  { %v3156_v25 = vpop.f32.mrb[46].mxu0 }
0x1062   :  { %v3157_v43 = vadd.f32 %v5501_v42, %v3156_v25  ;;  %v6161_v45 = vpop.f32.mrb[47].mxu0  ;;  %v3214_v42 = vld [vmem:[%s7988_s2 + $0x260] sm:$0xff]  ;;  %v3207_v25 = vld [vmem:[%s7988_s2 + $0x228] sm:$0xff] }
0x1063   :  { %v5513_v45 = vcombine.low %v3190_v33, %v3198_v34  ;;  %v6368_v33 = vld [vmem:[%s7989_s3 + $0x430] sm:$0xff]  }
0x1064   :  { %v3160_v44 = vadd.f32 %v3157_v43, %v7281_v51  ;;  %v5506_v51 = vcombine.high %v3186_v39, %v3194_v40  ;;  %v3215_v43 = vld [vmem:[%s7988_s2 + $0x268] sm:$0xff]  ;;  %v5529_v39 = vcombine.low %v3206_v41, %v3214_v42  ;;  %v6369_v34 = vld [vmem:[%s7989_s3 + $0x4b0] sm:$0xff]  }
0x1065   :  { %v5531_v40 = vcombine.low %v3207_v25, %v3215_v43 }
0x1066   :  { %v3163_v46 = vsel %vm614_vm8, %v3160_v44, 0.0  ;;  %3470 = vmatprep.subr.bf16.mxu1 %v5506_v51 }
0x1067   :  { %3164 = vadd.xlane.f32.xlu0 %v3163_v46  ;;  %3471 = vmatpush1.bf16.msra.mxu1 %v5505_v26  ;;  %v5530_v46 = vcombine.high %v3206_v41, %v3214_v42  ;;  %v3216_v26 = vld [vmem:[%s7988_s2 + $0x270] sm:$0xff]  ;;  %v3218_v41 = vld [vmem:[%s7988_s2 + $0x280] sm:$0x11]  ;;  %v3219_v42 = vld [vmem:[%s7988_s2 + $0x288] sm:$0x11] }
0x1068   :  { %3472 = vmatprep.subr.bf16.mxu1 %v5522_v57  ;;  %v5534_v56 = vcombine.high %v3208_v52, %v3216_v26  ;;  %v5536_v57 = vcombine.high %v3209_v9, %v3217_v53  ;;  %v5533_v58 = vcombine.low %v3208_v52, %v3216_v26 }
0x106b   :  { %3473 = vmatpush1.bf16.msra.mxu1 %v5521_v59  ;;  %v5535_v59 = vcombine.low %v3209_v9, %v3217_v53 }
0x106c   :  { %3552 = vmatprep.subr.bf16.mxu1 %v5510_v7  ;;  %v6349_v7 = vld [vmem:[%s7989_s3 + $0x488] sm:$0xff]  }
0x10f4   :  { %v3165_v47 = vpop.xlane.xlu0 %3164 }
0x10f5   :  { %v3166_v48 = vmul.f32 0.03125, %v3165_v47  ;;  %v5532_v47 = vcombine.high %v3207_v25, %v3215_v43  ;;  %v3226_v25 = vunpack.c.l.bf16 %v3218_v41  ;;  %v3228_v43 = vunpack.c.l.bf16 %v3219_v42 }
0x10f7   :  { %v3167_v49 = vsub.f32 %v3160_v44, %v3166_v48  ;;  %v5515_v44 = vcombine.low %v3191_v35, %v3199_v16  ;;  %v3192_v48 = vld [vmem:[%s7988_s2 + $0x1b0] sm:$0xff]  ;;  %v6370_v35 = vld [vmem:[%s7989_s3 + $0x478] sm:$0xff]  }
0x10f8   :  { %v6371_v16 = vld [vmem:[%s7989_s3 + $0x4f8] sm:$0xff]  }
0x10f9   :  { %v3168_v50 = vmul.f32 %v3167_v49, %v3167_v49 }
0x10fb   :  { %v3169_v63 = vsel %vm614_vm8, %v3168_v50, 0.0  ;;  %v3193_v50 = vld [vmem:[%s7988_s2 + $0x1b8] sm:$0xff] }
0x10fc   :  { %3170 = vadd.xlane.f32.xlu1 %v3169_v63  ;;  %v3201_v63 = vld [vmem:[%s7988_s2 + $0x1f8] sm:$0xff] }
0x10fd   :  { %v5520_v51 = vcombine.high %v3193_v50, %v3201_v63  ;;  %v5519_v55 = vcombine.low %v3193_v50, %v3201_v63  ;;  %v7585_v50 = vld [vmem:[%s7988_s2 + $0x290] sm:$0x11]  ;;  %v7590_v63 = vld [vmem:[%s7988_s2 + $0x298] sm:$0x11] }
0x1189   :  { %v3171_v13 = vpop.xlane.xlu1 %3170 }
0x118a   :  { %v3172_v14 = vmul.f32 0.03125, %v3171_v13  ;;  %v6353_v13 = vld [vmem:[%s7989_s3 + $0x490] sm:$0xff]  }
0x118c   :  { %v3173_v17 = vadd.f32 1e-05, %v3172_v14  ;;  %v6354_v14 = vld [vmem:[%s7989_s3 + $0x458] sm:$0xff]  }
0x118e   :  { %6490 = vrsqrt.f32 %v3173_v17  ;;  %v6355_v17 = vld [vmem:[%s7989_s3 + $0x4d8] sm:$0xff]  }
0x1198   :  { %v6491_v18 = vpop.eup %6490 }
0x1199   :  { %v3175_v20 = vmul.f32 %v6491_v18, %v3167_v49  ;;  %v3200_v49 = vld [vmem:[%s7988_s2 + $0x1f0] sm:$0xff]  ;;  %v6356_v18 = vld [vmem:[%s7989_s3 + $0x418] sm:$0xff]  }
0x119a   :  { %v5518_v0 = vcombine.high %v3192_v48, %v3200_v49  ;;  %v5517_v54 = vcombine.low %v3192_v48, %v3200_v49 }
0x119b   :  { %v3180_v23 = vmul.f32 %v5503_v19, %v3175_v20  ;;  %v6357_v19 = vld [vmem:[%s7989_s3 + $0x498] sm:$0xff]   ;;  %v6358_v20 = vld [vmem:[%s7989_s3 + $0x460] sm:$0xff]  }
0x119d   :  { %v7394_v31 = vadd.f32 %v5504_v21, %v3180_v23  ;;  %v6359_v21 = vld [vmem:[%s7989_s3 + $0x4e0] sm:$0xff]  }
0x119e   :  { %v6360_v23 = vld [vmem:[%s7989_s3 + $0x420] sm:$0xff]  }
0x119f   :  { %v7398_v28 = vpack.c.bf16 %v7394_v31, %v7394_v31 }
0x11a1   :  { %5537 = vmatmul.mubr.msk.bf16.vlgmr.msra.gmra.mrb[44].mxu1 %vm113_vm3, %v7398_v28  ;;  %5538 = vmatmul.mubr.msk.bf16.vlgmr.msra.gmra.mrb[48].mxu0 %vm113_vm3, %v7398_v28 }
0x11a2   :  { %3553 = vmatpush1.bf16.msra.mxu1 %v5509_v6  ;;  %3594 = vmatpush1.bf16.msra.mxu0 %v5511_v11  ;;  %v6348_v6 = vld [vmem:[%s7989_s3 + $0x408] sm:$0xff]   ;;  %v6351_v11 = vld [vmem:[%s7989_s3 + $0x4d0] sm:$0xff]  }
0x11a3   :  { %3554 = vmatprep.subr.bf16.mxu1 %v5526_v15  ;;  %3595 = vmatprep.subr.bf16.mxu0 %v5528_v32  ;;  %v6366_v15 = vld [vmem:[%s7989_s3 + $0x470] sm:$0xff]  }
0x11a4   :  { %3584 = vmatprep.mubr.bf16.mxu1 %v6527_v27  ;;  %3625 = vmatprep.mubr.bf16.mxu0 %v6527_v27  ;;  %v6367_v32 = vld [vmem:[%s7989_s3 + $0x4f0] sm:$0xff]  }
0x11a6   :  { %3555 = vmatpush1.bf16.msra.mxu1 %v5525_v36  ;;  %3596 = vmatpush1.bf16.msra.mxu0 %v5527_v37  ;;  %v6372_v36 = vld [vmem:[%s7989_s3 + $0x438] sm:$0xff]  }
0x11a7   :  { %3634 = vmatprep.subr.bf16.mxu1 %v5514_v24  ;;  %3675 = vmatprep.subr.bf16.mxu0 %v5516_v38  ;;  %v6373_v37 = vld [vmem:[%s7989_s3 + $0x4b8] sm:$0xff]   ;;  %v6374_v24 = vld [vmem:[%s7989_s3 + $0x540] sm:$0xff]  }
0x11a8   :  { %v6375_v38 = vld [vmem:[%s7989_s3 + $0x5c0] sm:$0xff]  }
0x11a9   :  { %5539 = vmatmul.mubr.msk.bf16.vlgmr.msra.gmra.mrb[48].mxu1 %vm113_vm3, %v7398_v28  ;;  %5540 = vmatmul.mubr.msk.bf16.vlgmr.msra.gmra.mrb[52].mxu0 %vm113_vm3, %v7398_v28 }
0x11aa   :  { %3635 = vmatpush1.bf16.msra.mxu1 %v5513_v45  ;;  %3676 = vmatpush1.bf16.msra.mxu0 %v5515_v44  ;;  %v3227_v45 = vunpack.c.h.bf16 %v3218_v41  ;;  %v3229_v44 = vunpack.c.h.bf16 %v3219_v42  ;;  %v6386_v41 = vld [vmem:[%s7989_s3 + $0x558] sm:$0xff]  }
0x11ab   :  { %3636 = vmatprep.subr.bf16.mxu1 %v5530_v46  ;;  %3677 = vmatprep.subr.bf16.mxu0 %v5532_v47  ;;  %v3246_v46 = vrot.slane %v3226_v25, %v6883_v62  ;;  %v3254_v47 = vrot.slane %v3228_v43, %v6883_v62  ;;  %v6387_v42 = vld [vmem:[%s7989_s3 + $0x5d8] sm:$0xff]  }
0x11ac   :  { %3666 = vmatprep.mubr.bf16.mxu1 %v6527_v27  ;;  %3707 = vmatprep.mubr.bf16.mxu0 %v6527_v27  ;;  %v3250_v48 = vrot.slane %v3227_v45, %v6883_v62  ;;  %v3258_v49 = vrot.slane %v3229_v44, %v6883_v62 }
0x11ae   :  { %3637 = vmatpush1.bf16.msra.mxu1 %v5529_v39  ;;  %3678 = vmatpush1.bf16.msra.mxu0 %v5531_v40 }
0x11af   :  { %3716 = vmatprep.subr.bf16.mxu1 %v5518_v0  ;;  %3757 = vmatprep.subr.bf16.mxu0 %v5520_v51 }
0x11b1   :  { %5541 = vmatmul.mubr.msk.bf16.vlgmr.msra.gmra.mrb[52].mxu1 %vm113_vm3, %v7398_v28  ;;  %5542 = vmatmul.mubr.msk.bf16.vlgmr.msra.gmra.mrb[56].mxu0 %vm113_vm3, %v7398_v28 }
0x11b2   :  { %3717 = vmatpush1.bf16.msra.mxu1 %v5517_v54  ;;  %3758 = vmatpush1.bf16.msra.mxu0 %v5519_v55 }
0x11b3   :  { %3718 = vmatprep.subr.bf16.mxu1 %v5534_v56  ;;  %3759 = vmatprep.subr.bf16.mxu0 %v5536_v57  ;;  %v3231_v56 = vunpack.c.h.bf16 %v7585_v50  ;;  %v3233_v57 = vunpack.c.h.bf16 %v7590_v63 }
0x11b4   :  { %3748 = vmatprep.mubr.bf16.mxu1 %v6527_v27  ;;  %3789 = vmatprep.mubr.bf16.mxu0 %v6527_v27  ;;  %v6347_v27 = vld [vmem:[%s7989_s3 + $0x4c8] sm:$0xff]  }
0x11b6   :  { %3719 = vmatpush1.bf16.msra.mxu1 %v5533_v58  ;;  %3760 = vmatpush1.bf16.msra.mxu0 %v5535_v59 }
0x11b7   :  { %5892 = vmatprep.subr.bf16.mxu1 %v6342_v60  ;;  %5914 = vmatprep.subr.bf16.mxu0 %v6343_v61 }
0x11b9   :  { %5543 = vmatmul.mubr.msk.bf16.vlgmr.msra.gmra.mrb[56].mxu1 %vm113_vm3, %v7398_v28  ;;  %5544 = vmatmul.mubr.msk.bf16.vlgmr.msra.gmra.mrb[60].mxu0 %vm113_vm3, %v7398_v28  ;;  %v6365_v28 = vld [vmem:[%s7989_s3 + $0x4a8] sm:$0xff]  }
0x11ba   :  { %5893 = vmatpush3.bf16.msra.mxu1 %v6344_v2  ;;  %5915 = vmatpush3.bf16.msra.mxu0 %v6345_v3 }
0x11bb   :  { %5894 = vmatprep.subr.bf16.mxu1 %v6346_v4  ;;  %5916 = vmatprep.subr.bf16.mxu0 %v6347_v27 }
0x11be   :  { %5895 = vmatpush3.bf16.msra.mxu1 %v6348_v6  ;;  %5917 = vmatpush3.bf16.msra.mxu0 %v6349_v7  ;;  %v3266_v6 = vrot.slane %v3231_v56, %v6883_v62  ;;  %v3274_v7 = vrot.slane %v3233_v57, %v6883_v62  ;;  %v6394_v56 = vld [vmem:[%s7989_s3 + $0x568] sm:$0xff]  }
0x11bf   :  { %5896 = vmatprep.subr.bf16.mxu1 %v6350_v10  ;;  %5918 = vmatprep.subr.bf16.mxu0 %v6351_v11  ;;  %v6376_v10 = vld [vmem:[%s7989_s3 + $0x500] sm:$0xff]   ;;  %v6395_v57 = vld [vmem:[%s7989_s3 + $0x5e8] sm:$0xff]  }
0x11c0   :  { %v6377_v11 = vld [vmem:[%s7989_s3 + $0x580] sm:$0xff]  }
0x11c2   :  { %5897 = vmatpush3.bf16.msra.mxu1 %v6352_v12  ;;  %5919 = vmatpush3.bf16.msra.mxu0 %v6353_v13 }
0x11c3   :  { %5898 = vmatprep.subr.bf16.mxu1 %v6354_v14  ;;  %5920 = vmatprep.subr.bf16.mxu0 %v6355_v17  ;;  %v6378_v14 = vld [vmem:[%s7989_s3 + $0x548] sm:$0xff]  }
0x11c4   :  { %v6379_v17 = vld [vmem:[%s7989_s3 + $0x5c8] sm:$0xff]  }
0x11c6   :  { %5899 = vmatpush3.bf16.msra.mxu1 %v6356_v18  ;;  %5921 = vmatpush3.bf16.msra.mxu0 %v6357_v19 }
0x11c7   :  { %5900 = vmatprep.subr.bf16.mxu1 %v6358_v20  ;;  %5922 = vmatprep.subr.bf16.mxu0 %v6359_v21 }
0x11ca   :  { %5901 = vmatpush3.bf16.msra.mxu1 %v6360_v23  ;;  %5923 = vmatpush3.bf16.msra.mxu0 %v6361_v8 }
0x11cb   :  { %5902 = vmatprep.subr.bf16.mxu1 %v6362_v29  ;;  %5924 = vmatprep.subr.bf16.mxu0 %v6363_v22 }
0x11ce   :  { %5903 = vmatpush3.bf16.msra.mxu1 %v6364_v30  ;;  %5925 = vmatpush3.bf16.msra.mxu0 %v6365_v28  ;;  %v6380_v30 = vld [vmem:[%s7989_s3 + $0x508] sm:$0xff]  }
0x11cf   :  { %5904 = vmatprep.subr.bf16.mxu1 %v6366_v15  ;;  %5926 = vmatprep.subr.bf16.mxu0 %v6367_v32  ;;  %v6381_v28 = vld [vmem:[%s7989_s3 + $0x588] sm:$0xff]  }
0x11d2   :  { %5905 = vmatpush3.bf16.msra.mxu1 %v6368_v33  ;;  %5927 = vmatpush3.bf16.msra.mxu0 %v6369_v34  ;;  %v6382_v33 = vld [vmem:[%s7989_s3 + $0x550] sm:$0xff]  }
0x11d3   :  { %5906 = vmatprep.subr.bf16.mxu1 %v6370_v35  ;;  %5928 = vmatprep.subr.bf16.mxu0 %v6371_v16  ;;  %v6383_v34 = vld [vmem:[%s7989_s3 + $0x5d0] sm:$0xff]  }
0x11d6   :  { %5907 = vmatpush3.bf16.msra.mxu1 %v6372_v36  ;;  %5929 = vmatpush3.bf16.msra.mxu0 %v6373_v37 }
0x11d7   :  { %5936 = vmatprep.subr.bf16.mxu1 %v6374_v24  ;;  %5958 = vmatprep.subr.bf16.mxu0 %v6375_v38  ;;  %v6384_v24 = vld [vmem:[%s7989_s3 + $0x510] sm:$0xff]  }
0x11d8   :  { %v6385_v38 = vld [vmem:[%s7989_s3 + $0x590] sm:$0xff]  }
0x1274   :  { %v3504_v39 = vpop.f32.mrb[44].mxu1  ;;  %v3545_v40 = vpop.f32.mrb[48].mxu0 }
0x1275   :  { %v3505_v0 = vadd.f32 %v3504_v39, %v3246_v46  ;;  %v3546_v51 = vadd.f32 %v3545_v40, %v3254_v47  ;;  %v3506_v52 = vpop.f32.mrb[45].mxu1  ;;  %v3547_v26 = vpop.f32.mrb[49].mxu0 }
0x1276   :  { %v3507_v9 = vadd.f32 %v3506_v52, %v3250_v48  ;;  %v3548_v53 = vadd.f32 %v3547_v26, %v3258_v49  ;;  %v3508_v54 = vpop.f32.mrb[46].mxu1  ;;  %v3549_v55 = vpop.f32.mrb[50].mxu0  ;;  %v6388_v48 = vld [vmem:[%s7989_s3 + $0x518] sm:$0xff]   ;;  %v7655_v52 = vld [vmem:[%s7988_s2 + $0x2a0] sm:$0x11] }
0x1277   :  { %v3798_v58 = vmax.f32 %v3505_v0, 0.0  ;;  %v3800_v59 = vmax.f32 %v3546_v51, 0.0  ;;  %v3509_v60 = vpop.f32.mrb[47].mxu1  ;;  %v3550_v61 = vpop.f32.mrb[51].mxu0  ;;  %v6389_v49 = vld [vmem:[%s7989_s3 + $0x598] sm:$0xff]   ;;  %v6390_v0 = vld [vmem:[%s7989_s3 + $0x560] sm:$0xff]   ;;  %v3230_v54 = vunpack.c.l.bf16 %v7585_v50  ;;  %v3232_v55 = vunpack.c.l.bf16 %v7590_v63 }
0x1278   :  { %v3799_v2 = vmax.f32 %v3507_v9, 0.0  ;;  %v3801_v3 = vmax.f32 %v3548_v53, 0.0  ;;  %v6391_v51 = vld [vmem:[%s7989_s3 + $0x5e0] sm:$0xff]   ;;  %v7660_v26 = vld [vmem:[%s7988_s2 + $0x2a8] sm:$0x11] }
0x1279   :  { %v4070_v12 = vpack.c.bf16 %v3798_v58, %v3798_v58  ;;  %v4072_v13 = vpack.c.bf16 %v3800_v59, %v3800_v59  ;;  %v6392_v9 = vld [vmem:[%s7989_s3 + $0x520] sm:$0xff]   ;;  %v3235_v58 = vunpack.c.h.bf16 %v7655_v52  ;;  %v3237_v50 = vunpack.c.h.bf16 %v7660_v26 }
0x127a   :  { %v4071_v4 = vpack.c.bf16 %v3799_v2, %v3799_v2  ;;  %v4073_v27 = vpack.c.bf16 %v3801_v3, %v3801_v3  ;;  %v6393_v53 = vld [vmem:[%s7989_s3 + $0x5a0] sm:$0xff]  }
0x127c   :  { %v7608_v18 = vpop.f32.mrb[48].mxu1  ;;  %v7610_v19 = vpop.f32.mrb[52].mxu0  ;;  %4891 = vmatprep.mubr.bf16.mxu1 %v4071_v4  ;;  %4931 = vmatprep.mubr.bf16.mxu0 %v4073_v27  ;;  %v6396_v4 = vld [vmem:[%s7989_s3 + $0x528] sm:$0xff]  }
0x127d   :  { %v3588_v20 = vpop.f32.mrb[49].mxu1  ;;  %v3629_v21 = vpop.f32.mrb[53].mxu0  ;;  %4892 = vmatmul.mubr.bf16.vlgmr.msra.gmra.mrb[60].mxu1 %v4070_v12  ;;  %4932 = vmatmul.mubr.bf16.vlgmr.msra.gmra.mrb[64].mxu0 %v4072_v13  ;;  %v6397_v27 = vld [vmem:[%s7989_s3 + $0x5a8] sm:$0xff]   ;;  %v6398_v12 = vld [vmem:[%s7989_s3 + $0x570] sm:$0xff]  }
0x127e   :  { %v3589_v23 = vadd.f32 %v3588_v20, %v3266_v6  ;;  %v3630_v8 = vadd.f32 %v3629_v21, %v3274_v7  ;;  %5937 = vmatpush3.bf16.msra.mxu1 %v6376_v10  ;;  %5959 = vmatpush3.bf16.msra.mxu0 %v6377_v11  ;;  %v3590_v29 = vpop.f32.mrb[50].mxu1  ;;  %v3631_v22 = vpop.f32.mrb[54].mxu0  ;;  %v3262_v6 = vrot.slane %v3230_v54, %v6883_v62  ;;  %v6399_v13 = vld [vmem:[%s7989_s3 + $0x5f0] sm:$0xff]   ;;  %v6422_v54 = vld [vmem:[%s7989_s3 + $0x660] sm:$0xff]  }
0x127f   :  { %v3591_v15 = vpop.f32.mrb[51].mxu1  ;;  %v3632_v32 = vpop.f32.mrb[55].mxu0  ;;  %5938 = vmatprep.subr.bf16.mxu1 %v6378_v14  ;;  %5960 = vmatprep.subr.bf16.mxu0 %v6379_v17  ;;  %v3270_v7 = vrot.slane %v3232_v55, %v6883_v62  ;;  %v3282_v14 = vrot.slane %v3235_v58, %v6883_v62  ;;  %v3290_v17 = vrot.slane %v3237_v50, %v6883_v62  ;;  %v6400_v20 = vld [vmem:[%s7989_s3 + $0x530] sm:$0xff]   ;;  %v6402_v29 = vld [vmem:[%s7989_s3 + $0x578] sm:$0xff]   ;;  %v6423_v55 = vld [vmem:[%s7989_s3 + $0x6e0] sm:$0xff]   ;;  %v3234_v58 = vunpack.c.l.bf16 %v7655_v52 }
0x1280   :  { %v3803_v35 = vmax.f32 %v3589_v23, 0.0  ;;  %v3805_v16 = vmax.f32 %v3630_v8, 0.0  ;;  %v6401_v21 = vld [vmem:[%s7989_s3 + $0x5b0] sm:$0xff]   ;;  %v3587_v23 = vadd.f32 %v7608_v18, %v3262_v6  ;;  %v6403_v22 = vld [vmem:[%s7989_s3 + $0x5f8] sm:$0xff]   ;;  %v6427_v52 = vld [vmem:[%s7989_s3 + $0x6e8] sm:$0xff]  }
0x1281   :  { %v3628_v8 = vadd.f32 %v7610_v19, %v3270_v7  ;;  %v6404_v18 = vld [vmem:[%s7989_s3 + $0x538] sm:$0xff]   ;;  %v6428_v7 = vld [vmem:[%s7989_s3 + $0x628] sm:$0xff]  }
0x1282   :  { %v4075_v36 = vpack.c.bf16 %v3803_v35, %v3803_v35  ;;  %v4077_v37 = vpack.c.bf16 %v3805_v16, %v3805_v16  ;;  %5939 = vmatpush3.bf16.msra.mxu1 %v6380_v30  ;;  %5961 = vmatpush3.bf16.msra.mxu0 %v6381_v28  ;;  %v6405_v19 = vld [vmem:[%s7989_s3 + $0x5b8] sm:$0xff]   ;;  %v3802_v15 = vmax.f32 %v3587_v23, 0.0  ;;  %v6433_v23 = vld [vmem:[%s7989_s3 + $0x6b0] sm:$0xff]  }
0x1283   :  { %5940 = vmatprep.subr.bf16.mxu1 %v6382_v33  ;;  %5962 = vmatprep.subr.bf16.mxu0 %v6383_v34  ;;  %v3804_v32 = vmax.f32 %v3628_v8, 0.0  ;;  %v6406_v33 = vld [vmem:[%s7989_s3 + $0x640] sm:$0xff]   ;;  %v7788_v50 = vld [vmem:[%s7988_s2 + $0x2b8] sm:$0x11] }
0x1284   :  { %v7636_v25 = vpop.f32.mrb[52].mxu1  ;;  %v7638_v43 = vpop.f32.mrb[56].mxu0  ;;  %4971 = vmatprep.mubr.bf16.mxu1 %v4075_v36  ;;  %5011 = vmatprep.mubr.bf16.mxu0 %v4077_v37  ;;  %v6407_v34 = vld [vmem:[%s7989_s3 + $0x6c0] sm:$0xff]   ;;  %v4074_v37 = vpack.c.bf16 %v3802_v15, %v3802_v15  ;;  %v3241_v6 = vunpack.c.h.bf16 %v7788_v50  ;;  %v6434_v8 = vld [vmem:[%s7989_s3 + $0x678] sm:$0xff]  }
0x1285   :  { %v3670_v45 = vpop.f32.mrb[53].mxu1  ;;  %v3711_v44 = vpop.f32.mrb[57].mxu0  ;;  %v6408_v36 = vld [vmem:[%s7989_s3 + $0x600] sm:$0xff]  }
0x1286   :  { %5941 = vmatpush3.bf16.msra.mxu1 %v6384_v24  ;;  %5963 = vmatpush3.bf16.msra.mxu0 %v6385_v38  ;;  %v3672_v46 = vpop.f32.mrb[54].mxu1  ;;  %v3713_v47 = vpop.f32.mrb[58].mxu0  ;;  %v3671_v30 = vadd.f32 %v3670_v45, %v3282_v14  ;;  %v3712_v28 = vadd.f32 %v3711_v44, %v3290_v17  ;;  %v4076_v24 = vpack.c.bf16 %v3804_v32, %v3804_v32  ;;  %v6409_v38 = vld [vmem:[%s7989_s3 + $0x680] sm:$0xff]   ;;  %v6411_v45 = vld [vmem:[%s7989_s3 + $0x6c8] sm:$0xff]  }
0x1287   :  { %v3673_v39 = vpop.f32.mrb[55].mxu1  ;;  %v3714_v40 = vpop.f32.mrb[59].mxu0  ;;  %5942 = vmatprep.subr.bf16.mxu1 %v6386_v41  ;;  %5964 = vmatprep.subr.bf16.mxu0 %v6387_v42  ;;  %v6410_v42 = vld [vmem:[%s7989_s3 + $0x648] sm:$0xff]   ;;  %v3306_v17 = vrot.slane %v3241_v6, %v6883_v62 }
0x1288   :  { %v3807_v35 = vmax.f32 %v3671_v30, 0.0  ;;  %v3809_v16 = vmax.f32 %v3712_v28, 0.0  ;;  %v6412_v46 = vld [vmem:[%s7989_s3 + $0x608] sm:$0xff]   ;;  %v6416_v39 = vld [vmem:[%s7989_s3 + $0x610] sm:$0xff]   ;;  %v6436_v28 = vld [vmem:[%s7989_s3 + $0x638] sm:$0xff]  }
0x1289   :  { %v6413_v47 = vld [vmem:[%s7989_s3 + $0x688] sm:$0xff]   ;;  %v6417_v40 = vld [vmem:[%s7989_s3 + $0x690] sm:$0xff]  }
0x128a   :  { %5943 = vmatpush3.bf16.msra.mxu1 %v6388_v48  ;;  %5965 = vmatpush3.bf16.msra.mxu0 %v6389_v49  ;;  %v4079_v41 = vpack.c.bf16 %v3807_v35, %v3807_v35  ;;  %v4081_v44 = vpack.c.bf16 %v3809_v16, %v3809_v16  ;;  %v6414_v48 = vld [vmem:[%s7989_s3 + $0x650] sm:$0xff]   ;;  %v6441_v35 = vld [vmem:[%s7989_s3 + $0x780] sm:$0xff]  }
0x128b   :  { %5944 = vmatprep.subr.bf16.mxu1 %v6390_v0  ;;  %5966 = vmatprep.subr.bf16.mxu0 %v6391_v51  ;;  %v6415_v49 = vld [vmem:[%s7989_s3 + $0x6d0] sm:$0xff]   ;;  %v6418_v0 = vld [vmem:[%s7989_s3 + $0x658] sm:$0xff]  }
0x128c   :  { %v7677_v59 = vpop.f32.mrb[56].mxu1  ;;  %v7679_v60 = vpop.f32.mrb[60].mxu0  ;;  %v6419_v51 = vld [vmem:[%s7989_s3 + $0x6d8] sm:$0xff]  }
0x128d   :  { %v7682_v61 = vpop.f32.mrb[57].mxu1  ;;  %v7684_v63 = vpop.f32.mrb[61].mxu0 }
0x128e   :  { %5945 = vmatpush3.bf16.msra.mxu1 %v6392_v9  ;;  %5967 = vmatpush3.bf16.msra.mxu0 %v6393_v53  ;;  %v3754_v2 = vpop.f32.mrb[58].mxu1  ;;  %v3795_v3 = vpop.f32.mrb[62].mxu0  ;;  %v6420_v9 = vld [vmem:[%s7989_s3 + $0x618] sm:$0xff]  }
0x128f   :  { %v3755_v10 = vpop.f32.mrb[59].mxu1  ;;  %v3796_v11 = vpop.f32.mrb[63].mxu0  ;;  %5946 = vmatprep.subr.bf16.mxu1 %v6394_v56  ;;  %5968 = vmatprep.subr.bf16.mxu0 %v6395_v57  ;;  %v6421_v53 = vld [vmem:[%s7989_s3 + $0x698] sm:$0xff]   ;;  %v7779_v56 = vld [vmem:[%s7988_s2 + $0x2b0] sm:$0x11]  ;;  %v6424_v57 = vld [vmem:[%s7989_s3 + $0x620] sm:$0xff]  }
0x1290   :  { %v6425_v2 = vld [vmem:[%s7989_s3 + $0x6a0] sm:$0xff]   ;;  %v6426_v3 = vld [vmem:[%s7989_s3 + $0x668] sm:$0xff]   ;;  %v3278_v10 = vrot.slane %v3234_v58, %v6883_v62  ;;  %v6430_v11 = vld [vmem:[%s7989_s3 + $0x670] sm:$0xff]  }
0x1291   :  { %v6459_v58 = vld [vmem:[%s7989_s3 + $0x7e8] sm:$0xff]  }
0x1292   :  { %5947 = vmatpush3.bf16.msra.mxu1 %v6396_v4  ;;  %5969 = vmatpush3.bf16.msra.mxu0 %v6397_v27  ;;  %v3236_v4 = vunpack.c.l.bf16 %v7660_v26  ;;  %v3239_v27 = vunpack.c.h.bf16 %v7779_v56  ;;  %v6429_v26 = vld [vmem:[%s7989_s3 + $0x6a8] sm:$0xff]  }
0x1293   :  { %5948 = vmatprep.subr.bf16.mxu1 %v6398_v12  ;;  %5970 = vmatprep.subr.bf16.mxu0 %v6399_v13  ;;  %v6431_v13 = vld [vmem:[%s7989_s3 + $0x6f0] sm:$0xff]  }
0x1294   :  { %v3286_v12 = vrot.slane %v3236_v4, %v6883_v62  ;;  %v3298_v14 = vrot.slane %v3239_v27, %v6883_v62  ;;  %v6464_v27 = vld [vmem:[%s7989_s3 + $0x730] sm:$0xff]  }
0x1296   :  { %5949 = vmatpush3.bf16.msra.mxu1 %v6400_v20  ;;  %5971 = vmatpush3.bf16.msra.mxu0 %v6401_v21  ;;  %v6432_v20 = vld [vmem:[%s7989_s3 + $0x630] sm:$0xff]   ;;  %v3669_v21 = vadd.f32 %v7636_v25, %v3278_v10  ;;  %v3753_v30 = vadd.f32 %v7682_v61, %v3298_v14  ;;  %v3794_v25 = vadd.f32 %v7684_v63, %v3306_v17  ;;  %v6439_v61 = vld [vmem:[%s7989_s3 + $0x7c0] sm:$0xff]  }
0x1297   :  { %5950 = vmatprep.subr.bf16.mxu1 %v6402_v29  ;;  %5972 = vmatprep.subr.bf16.mxu0 %v6403_v22  ;;  %v3710_v29 = vadd.f32 %v7638_v43, %v3286_v12  ;;  %v6435_v22 = vld [vmem:[%s7989_s3 + $0x6f8] sm:$0xff]  }
0x1298   :  { %v6437_v43 = vld [vmem:[%s7989_s3 + $0x6b8] sm:$0xff]   ;;  %v3811_v63 = vmax.f32 %v3753_v30, 0.0  ;;  %v3813_v32 = vmax.f32 %v3794_v25, 0.0 }
0x1299   :  { %v3808_v15 = vmax.f32 %v3710_v29, 0.0  ;;  %v6469_v12 = vld [vmem:[%s7989_s3 + $0x7b8] sm:$0xff]  }
0x129a   :  { %5951 = vmatpush3.bf16.msra.mxu1 %v6404_v18  ;;  %5973 = vmatpush3.bf16.msra.mxu0 %v6405_v19  ;;  %v3806_v18 = vmax.f32 %v3669_v21, 0.0  ;;  %v6438_v19 = vld [vmem:[%s7989_s3 + $0x740] sm:$0xff]  }
0x129b   :  { %5980 = vmatprep.subr.bf16.mxu1 %v6406_v33  ;;  %6002 = vmatprep.subr.bf16.mxu0 %v6407_v34  ;;  %v6440_v33 = vld [vmem:[%s7989_s3 + $0x700] sm:$0xff]   ;;  %v4080_v16 = vpack.c.bf16 %v3808_v15, %v3808_v15 }
0x129c   :  { %v4078_v34 = vpack.c.bf16 %v3806_v18, %v3806_v18  ;;  %v5545_v21 = vld [vmem:[%s7987_s1 + $0x120] ss:$0 sm:$0xff] }
0x129d   :  { %4972 = vmatmul.mubr.bf16.vlgmr.msra.gmra.mrb[64].mxu1 %v4074_v37  ;;  %5012 = vmatmul.mubr.bf16.vlgmr.msra.gmra.mrb[68].mxu0 %v4076_v24  ;;  %v4083_v37 = vpack.c.bf16 %v3811_v63, %v3811_v63  ;;  %v6443_v24 = vld [vmem:[%s7989_s3 + $0x7c8] sm:$0xff]  }
0x129e   :  { %5981 = vmatpush3.bf16.msra.mxu1 %v6408_v36  ;;  %5051 = vmatprep.mubr.bf16.mxu1 %v4079_v41  ;;  %v6442_v36 = vld [vmem:[%s7989_s3 + $0x748] sm:$0xff]  }
0x129f   :  { %6003 = vmatpush3.bf16.msra.mxu0 %v6409_v38  ;;  %5091 = vmatprep.mubr.bf16.mxu0 %v4081_v44  ;;  %v4085_v38 = vpack.c.bf16 %v3813_v32, %v3813_v32  ;;  %v6444_v41 = vld [vmem:[%s7989_s3 + $0x708] sm:$0xff]   ;;  %v6447_v44 = vld [vmem:[%s7989_s3 + $0x7d0] sm:$0xff]  }
0x12a0   :  { %5982 = vmatprep.subr.bf16.mxu1 %v6410_v42  ;;  %6004 = vmatprep.subr.bf16.mxu0 %v6411_v45  ;;  %v6445_v42 = vld [vmem:[%s7989_s3 + $0x788] sm:$0xff]   ;;  %v6446_v45 = vld [vmem:[%s7989_s3 + $0x750] sm:$0xff]  }
0x12a2   :  { %5983 = vmatpush3.bf16.msra.mxu1 %v6412_v46  ;;  %v6448_v46 = vld [vmem:[%s7989_s3 + $0x710] sm:$0xff]  }
0x12a3   :  { %6005 = vmatpush3.bf16.msra.mxu0 %v6413_v47  ;;  %5984 = vmatprep.subr.bf16.mxu1 %v6414_v48  ;;  %v6449_v47 = vld [vmem:[%s7989_s3 + $0x790] sm:$0xff]   ;;  %v6450_v48 = vld [vmem:[%s7989_s3 + $0x758] sm:$0xff]  }
0x12a4   :  { %6006 = vmatprep.subr.bf16.mxu0 %v6415_v49  ;;  %v6451_v49 = vld [vmem:[%s7989_s3 + $0x7d8] sm:$0xff]  }
0x12a6   :  { %5985 = vmatpush3.bf16.msra.mxu1 %v6416_v39  ;;  %v6452_v39 = vld [vmem:[%s7989_s3 + $0x718] sm:$0xff]  }
0x12a7   :  { %6007 = vmatpush3.bf16.msra.mxu0 %v6417_v40  ;;  %5986 = vmatprep.subr.bf16.mxu1 %v6418_v0  ;;  %v6453_v40 = vld [vmem:[%s7989_s3 + $0x798] sm:$0xff]   ;;  %v6454_v0 = vld [vmem:[%s7989_s3 + $0x760] sm:$0xff]  }
0x12a8   :  { %6008 = vmatprep.subr.bf16.mxu0 %v6419_v51  ;;  %v6455_v51 = vld [vmem:[%s7989_s3 + $0x7e0] sm:$0xff]  }
0x12aa   :  { %5987 = vmatpush3.bf16.msra.mxu1 %v6420_v9  ;;  %v6456_v9 = vld [vmem:[%s7989_s3 + $0x720] sm:$0xff]  }
0x12ab   :  { %6009 = vmatpush3.bf16.msra.mxu0 %v6421_v53  ;;  %5988 = vmatprep.subr.bf16.mxu1 %v6422_v54  ;;  %v3238_v53 = vunpack.c.l.bf16 %v7779_v56  ;;  %v6457_v54 = vld [vmem:[%s7989_s3 + $0x7a0] sm:$0xff]   ;;  %v6460_v56 = vld [vmem:[%s7989_s3 + $0x728] sm:$0xff]  }
0x12ac   :  { %6010 = vmatprep.subr.bf16.mxu0 %v6423_v55  ;;  %v6458_v55 = vld [vmem:[%s7989_s3 + $0x768] sm:$0xff]  }
0x12ae   :  { %5989 = vmatpush3.bf16.msra.mxu1 %v6424_v57  ;;  %v3240_v57 = vunpack.c.l.bf16 %v7788_v50  ;;  %v6462_v50 = vld [vmem:[%s7989_s3 + $0x770] sm:$0xff]  }
0x12af   :  { %6011 = vmatpush3.bf16.msra.mxu0 %v6425_v2  ;;  %5990 = vmatprep.subr.bf16.mxu1 %v6426_v3  ;;  %v3294_v2 = vrot.slane %v3238_v53, %v6883_v62  ;;  %v6461_v3 = vld [vmem:[%s7989_s3 + $0x7a8] sm:$0xff]  }
0x12b0   :  { %6012 = vmatprep.subr.bf16.mxu0 %v6427_v52  ;;  %v3302_v4 = vrot.slane %v3240_v57, %v6883_v62  ;;  %v6463_v52 = vld [vmem:[%s7989_s3 + $0x7f0] sm:$0xff]   ;;  %v6466_v62 = vld [vmem:[%s7989_s3 + $0x778] sm:$0xff]  }
0x12b1   :  { %v3751_v6 = vadd.f32 %v7677_v59, %v3294_v2  ;;  %v6468_v59 = vld [vmem:[%s7989_s3 + $0x738] sm:$0xff]  }
0x12b2   :  { %5991 = vmatpush3.bf16.msra.mxu1 %v6428_v7  ;;  %v6465_v7 = vld [vmem:[%s7989_s3 + $0x7b0] sm:$0xff]   ;;  %v3792_v10 = vadd.f32 %v7679_v60, %v3302_v4 }
0x12b3   :  { %6013 = vmatpush3.bf16.msra.mxu0 %v6429_v26  ;;  %5992 = vmatprep.subr.bf16.mxu1 %v6430_v11  ;;  %v6467_v26 = vld [vmem:[%s7989_s3 + $0x7f8] sm:$0xff]   ;;  %v3810_v11 = vmax.f32 %v3751_v6, 0.0 }
0x12b4   :  { %6014 = vmatprep.subr.bf16.mxu0 %v6431_v13  ;;  %v3812_v13 = vmax.f32 %v3792_v10, 0.0 }
0x12b5   :  { %v4082_v60 = vpack.c.bf16 %v3810_v11, %v3810_v11  ;;  %v5206_v11 = vld [vmem:[%s7987_s1 + $0x18] sm:$0xff] }
0x12b6   :  { %5993 = vmatpush3.bf16.msra.mxu1 %v6432_v20  ;;  %v4084_v14 = vpack.c.bf16 %v3812_v13, %v3812_v13  ;;  %v5208_v13 = vld [vmem:[%s7987_s1 + $0x28] sm:$0xff] }
0x12b7   :  { %6015 = vmatpush3.bf16.msra.mxu0 %v6433_v23  ;;  %5994 = vmatprep.subr.bf16.mxu1 %v6434_v8 }
0x12b8   :  { %6016 = vmatprep.subr.bf16.mxu0 %v6435_v22 }
0x12ba   :  { %5995 = vmatpush3.bf16.msra.mxu1 %v6436_v28 }
0x12bb   :  { %6017 = vmatpush3.bf16.msra.mxu0 %v6437_v43  ;;  %6024 = vmatprep.subr.bf16.mxu1 %v6438_v19 }
0x12bc   :  { %6046 = vmatprep.subr.bf16.mxu0 %v6439_v61 }
0x12bd   :  { %5052 = vmatmul.mubr.bf16.vlgmr.msra.gmra.mrb[68].mxu1 %v4078_v34 }
0x12be   :  { %5092 = vmatmul.mubr.bf16.vlgmr.msra.gmra.mrb[72].mxu0 %v4080_v16  ;;  %6025 = vmatpush3.bf16.msra.mxu1 %v6440_v33 }
0x12bf   :  { %5131 = vmatprep.mubr.bf16.mxu1 %v4083_v37  ;;  %6047 = vmatpush3.bf16.msra.mxu0 %v6441_v35 }
0x12c0   :  { %5171 = vmatprep.mubr.bf16.mxu0 %v4085_v38  ;;  %6026 = vmatprep.subr.bf16.mxu1 %v6442_v36 }
0x12c1   :  { %6048 = vmatprep.subr.bf16.mxu0 %v6443_v24 }
0x12c2   :  { %6027 = vmatpush3.bf16.msra.mxu1 %v6444_v41 }
0x12c3   :  { %6049 = vmatpush3.bf16.msra.mxu0 %v6445_v42  ;;  %6028 = vmatprep.subr.bf16.mxu1 %v6446_v45 }
0x12c4   :  { %6050 = vmatprep.subr.bf16.mxu0 %v6447_v44 }
0x12c6   :  { %6029 = vmatpush3.bf16.msra.mxu1 %v6448_v46 }
0x12c7   :  { %6051 = vmatpush3.bf16.msra.mxu0 %v6449_v47  ;;  %6030 = vmatprep.subr.bf16.mxu1 %v6450_v48 }
0x12c8   :  { %6052 = vmatprep.subr.bf16.mxu0 %v6451_v49 }
0x12ca   :  { %6031 = vmatpush3.bf16.msra.mxu1 %v6452_v39 }
0x12cb   :  { %6053 = vmatpush3.bf16.msra.mxu0 %v6453_v40  ;;  %6032 = vmatprep.subr.bf16.mxu1 %v6454_v0 }
0x12cc   :  { %6054 = vmatprep.subr.bf16.mxu0 %v6455_v51 }
0x12ce   :  { %6033 = vmatpush3.bf16.msra.mxu1 %v6456_v9 }
0x12cf   :  { %6055 = vmatpush3.bf16.msra.mxu0 %v6457_v54  ;;  %6034 = vmatprep.subr.bf16.mxu1 %v6458_v55 }
0x12d0   :  { %6056 = vmatprep.subr.bf16.mxu0 %v6459_v58 }
0x12d2   :  { %6035 = vmatpush3.bf16.msra.mxu1 %v6460_v56 }
0x12d3   :  { %6057 = vmatpush3.bf16.msra.mxu0 %v6461_v3  ;;  %6036 = vmatprep.subr.bf16.mxu1 %v6462_v50 }
0x12d4   :  { %6058 = vmatprep.subr.bf16.mxu0 %v6463_v52 }
0x12d6   :  { %6037 = vmatpush3.bf16.msra.mxu1 %v6464_v27 }
0x12d7   :  { %6059 = vmatpush3.bf16.msra.mxu0 %v6465_v7  ;;  %6038 = vmatprep.subr.bf16.mxu1 %v6466_v62 }
0x12d8   :  { %6060 = vmatprep.subr.bf16.mxu0 %v6467_v26 }
0x12da   :  { %6039 = vmatpush3.bf16.msra.mxu1 %v6468_v59  ;;  %v5205_v59 = vld [vmem:[%s7987_s1 + $0x10] sm:$0xff] }
0x12db   :  { %6061 = vmatpush3.bf16.msra.mxu0 %v6469_v12  ;;  %6197 = vmatprep.subr.bf16.mxu1 %v6520_v5  ;;  %v6198_v12 = vpack.c.bf16 %v5206_v11, %v5205_v59 }
0x12dd   :  { %5132 = vmatmul.mubr.bf16.vlgmr.msra.gmra.mrb[72].mxu1 %v4082_v60 }
0x12de   :  { %5172 = vmatmul.mubr.bf16.vlgmr.msra.gmra.mrb[76].mxu0 %v4084_v14  ;;  %6170 = vmatprep.mubr.msk.f32.mxu1 %vm6519_vm2, %v6518_v1 }
0x12df   :  { %6199 = vmatpush3.bf16.msra.mxu1 %v6198_v12 }
0x12e0   :  { %6200 = vmatprep.subr.bf16.mxu1 %v6520_v5 }
0x1350   :  { %v5908_v17 = vpop.f32.mrb[60].mxu1  ;;  %v5930_v20 = vpop.f32.mrb[64].mxu0 }
0x1351   :  { %v5909_v23 = vpop.f32.mrb[61].mxu1  ;;  %v5931_v8 = vpop.f32.mrb[65].mxu0 }
0x1352   :  { %v5910_v29 = vadd.f32 %v5909_v23, %v5908_v17  ;;  %v5932_v22 = vadd.f32 %v5931_v8, %v5930_v20  ;;  %v5911_v30 = vpop.f32.mrb[62].mxu1  ;;  %v5933_v25 = vpop.f32.mrb[66].mxu0  ;;  %v5674_v23 = vld [vmem:[%s7987_s1 + $0x110] ss:$0 sm:$0xff]  ;;  %v5675_v8 = vld [vmem:[%s7987_s1 + $0x118] ss:$0 sm:$0xff] }
0x1353   :  { %v5912_v28 = vpop.f32.mrb[63].mxu1  ;;  %v5934_v18 = vpop.f32.mrb[67].mxu0  ;;  %v5676_v30 = vld [vmem:[%s7987_s1 + $0x30] ss:$0 sm:$0xff] }
0x1354   :  { %v4894_v43 = vadd.f32 %v5910_v29, %v5545_v21 }
0x1356   :  { %v4934_v19 = vadd.f32 %v5932_v22, %v4894_v43 }
0x1370   :  { %v5952_v15 = vpop.f32.mrb[64].mxu1  ;;  %v5974_v61 = vpop.f32.mrb[68].mxu0 }
0x1371   :  { %v5953_v63 = vpop.f32.mrb[65].mxu1  ;;  %v5975_v1 = vpop.f32.mrb[69].mxu0 }
0x1372   :  { %v5954_v32 = vadd.f32 %v5953_v63, %v5952_v15  ;;  %v5976_v33 = vadd.f32 %v5975_v1, %v5974_v61  ;;  %v5955_v34 = vpop.f32.mrb[66].mxu1  ;;  %v5977_v35 = vpop.f32.mrb[70].mxu0 }
0x1373   :  { %v5956_v16 = vpop.f32.mrb[67].mxu1  ;;  %v5978_v36 = vpop.f32.mrb[71].mxu0 }
0x1374   :  { %v4974_v37 = vadd.f32 %v5954_v32, %v4934_v19 }
0x1376   :  { %v5014_v24 = vadd.f32 %v5976_v33, %v4974_v37 }
0x1390   :  { %v5996_v38 = vpop.f32.mrb[68].mxu1 }
0x1391   :  { %v6018_v41 = vpop.f32.mrb[72].mxu0  ;;  %v5997_v42 = vpop.f32.mrb[69].mxu1 }
0x1392   :  { %v5998_v45 = vadd.f32 %v5997_v42, %v5996_v38  ;;  %v6019_v44 = vpop.f32.mrb[73].mxu0  ;;  %v5999_v46 = vpop.f32.mrb[70].mxu1 }
0x1393   :  { %v6020_v47 = vadd.f32 %v6019_v44, %v6018_v41  ;;  %v6021_v48 = vpop.f32.mrb[74].mxu0  ;;  %v6000_v49 = vpop.f32.mrb[71].mxu1 }
0x1394   :  { %v5054_v39 = vadd.f32 %v5998_v45, %v5014_v24  ;;  %v6022_v40 = vpop.f32.mrb[75].mxu0 }
0x1396   :  { %v5094_v0 = vadd.f32 %v6020_v47, %v5054_v39 }
0x13b0   :  { %v6040_v51 = vpop.f32.mrb[72].mxu1 }
0x13b1   :  { %v6062_v9 = vpop.f32.mrb[76].mxu0  ;;  %v6041_v53 = vpop.f32.mrb[73].mxu1 }
0x13b2   :  { %v6042_v54 = vadd.f32 %v6041_v53, %v6040_v51  ;;  %v6063_v55 = vpop.f32.mrb[77].mxu0  ;;  %v6043_v57 = vpop.f32.mrb[74].mxu1 }
0x13b3   :  { %v6064_v58 = vadd.f32 %v6063_v55, %v6062_v9  ;;  %v6065_v56 = vpop.f32.mrb[78].mxu0  ;;  %v6044_v2 = vpop.f32.mrb[75].mxu1 }
0x13b4   :  { %v5134_v3 = vadd.f32 %v6042_v54, %v5094_v0  ;;  %v6066_v50 = vpop.f32.mrb[79].mxu0 }
0x13b6   :  { %v5174_v4 = vadd.f32 %v6064_v58, %v5134_v3 }
0x13b8   :  { %v5179_v52 = vadd.f32 %v5174_v4, %v7394_v31  ;;  %v5207_v31 = vld [vmem:[%s7987_s1 + $0x20] sm:$0xff] }
0x13b9   :  { %v6201_v60 = vpack.c.bf16 %v5208_v13, %v5207_v31 }
0x13ba   :  { %v5182_v27 = vsel %vm614_vm8, %v5179_v52, 0.0 }
0x13bb   :  { %5183 = vadd.xlane.f32.xlu0 %v5182_v27  ;;  %6202 = vmatpush3.bf16.msra.mxu1 %v6201_v60 }
0x1448   :  { %v5184_v6 = vpop.xlane.xlu0 %5183 }
0x1449   :  { %v5185_v7 = vmul.f32 0.03125, %v5184_v6 }
0x144b   :  { %v5186_v62 = vsub.f32 %v5179_v52, %v5185_v7 }
0x144d   :  { %v5187_v10 = vmul.f32 %v5186_v62, %v5186_v62 }
0x144f   :  { %v5188_v26 = vsel %vm614_vm8, %v5187_v10, 0.0 }
0x1450   :  { %5189 = vadd.xlane.f32.xlu0 %v5188_v26 }
0x14dd   :  { %v5190_v14 = vpop.xlane.xlu0 %5189 }
0x14de   :  { %v5191_v17 = vmul.f32 0.03125, %v5190_v14 }
0x14e0   :  { %v5192_v20 = vadd.f32 1e-05, %v5191_v17 }
0x14e2   :  { %6492 = vrsqrt.f32 %v5192_v20 }
0x14ec   :  { %v6493_v21 = vpop.eup %6492 }
0x14ed   :  { %v5194_v5 = vmul.f32 %v6493_v21, %v5186_v62 }
0x14ef   :  { %v5199_v29 = vmul.f32 %v5674_v23, %v5194_v5 }
0x14f1   :  { %v5204_v22 = vadd.f32 %v5675_v8, %v5199_v29 }
0x14f3   :  { %6171 = vmatmul.mubr.msk.f32.vlgmr.msra.gmra.mrb[42].mxu1 %vm113_vm3, %v5204_v22 }
0x15c6   :  { %v5283_v25 = vpop.f32.mrb[42].mxu1 }
0x15c7   :  { %v5284_v28 = vadd.f32 %v5676_v30, %v5283_v25  ;;  %v6172_v18 = vpop.f32.mrb[43].mxu1 }
0x15c9   :  { %5288 = vst.msk [vmem:[#allocation2] sm:$0x3] %vm5287_vm9, %v5284_v28 }
0x15ca   :  { %6505 = shalt.err (!%p6502_p4)
}
0x15cb   :  { %s6506_s27 = scalar_lea.hbm %s7990_s4, 32 }
0x15cc   :  { %p6507_p5 = scmp.ne.s32.totalorder %s7990_s4, %s6506_s27  ;;  %p6510_p6 = scmp.lt.u32.totalorder %s6506_s27, %s7990_s4 }
0x15ce   :  { %p6512_p7 = pnand %p6510_p6, %p6507_p5 }
0x15d0   :  { %6515 = shalt.err (!%p6512_p7)
}
0x15d1   :  { %5298 = dma.vmem_to_hbm [thread:$0]  %s5296_s23, 32, %s7990_s4, [#allocation3]  }
0x15d2   :  { %6516 = dma.done.wait [#allocation3], 32  }
0x15d3   :  { %6517 = vsyncadd [#allocation3], 4294967264 }
0x15d4   :  { %5302 = vsyncpa [#allocation3], 1 }

</bundles_post_ra>
